<compile_context>
chip_gen: v5e
topology: v5e:2x2
jax: 0.10.0
libtpu: 0.0.40
codegen_flags: <defaults>
</compile_context>

<pallas_src>
import jax
import jax.numpy as jnp
from jax import lax
from jax.experimental import pallas as pl
from jax.experimental.pallas import tpu as pltpu

BN_EPS = 1e-5
LANE = 128
TILE_BYTES = 2 * 1024 * 1024      # target HBM bytes (in + out) moved per grid step

# parity -> {input row/col shift d : transposed-conv kernel tap k}
#   even output index 2r   <- x[r]   * w[1]
#   odd  output index 2r+1 <- x[r]   * w[2]  +  x[r+1] * w[0]
_TAPS_1D = {0: {0: 1}, 1: {0: 2, 1: 0}}


def _cdiv(a, b):
    return (a + b - 1) // b


def _round_up(a, b):
    return _cdiv(a, b) * b


def _phase_weights(w_pt):
    """PyTorch ConvTranspose2d weights [Cin, Cout, 3, 3] -> [4*Cin, 4*Cout].
    Rows grouped by input shift d = 2*dh+dw, columns by output phase p = 2*ph+pw
    (phase-major, channel-minor); taps not used by a phase are zero."""
    cin, cout = w_pt.shape[0], w_pt.shape[1]
    wall = jnp.zeros((4, cin, 4, cout), jnp.float32)
    for ph in (0, 1):
        for pw in (0, 1):
            p = 2 * ph + pw
            for dh, kh in _TAPS_1D[ph].items():
                for dw, kw in _TAPS_1D[pw].items():
                    d = 2 * dh + dw
                    wall = wall.at[d, :, p, :].set(w_pt[:, :, kh, kw])
    return wall.reshape(4 * cin, 4 * cout)


# ---------------------------------------------------------------- kernel ----
def _make_fused_kernel(cout, gc4, inv_count):
    reps = gc4 // cout            # lane positions per channel class (= 4 * G)

    def kernel(p_ref, w_ref, gamma_ref, beta_ref, out_ref,
               sum_ref, sq_ref, scale_ref, shift_ref):
        pass_id = pl.program_id(0)   # 0 = statistics pass, 1 = apply pass
        t = pl.program_id(1)

        @pl.when(jnp.logical_and(pass_id == 0, t == 0))
        def _init():
            sum_ref[...] = jnp.zeros_like(sum_ref)
            sq_ref[...] = jnp.zeros_like(sq_ref)

        # 4-phase transposed conv for this tile: one bf16 MXU matmul, f32 acc.
        # (bias omitted: it is absorbed exactly by the BatchNorm mean.)
        acc = jnp.dot(p_ref[...], w_ref[...], preferred_element_type=jnp.float32)

        @pl.when(pass_id == 0)
        def _stats():
            # Zero-padded tail rows contribute exactly 0 (no bias) -> no masking.
            sum_ref[...] += jnp.sum(acc, axis=0, keepdims=True)
            sq_ref[...] += jnp.sum(acc * acc, axis=0, keepdims=True)

        @pl.when(jnp.logical_and(pass_id == 1, t == 0))
        def _fold():
            # Fold the per-(group, phase, channel) column sums down to per-channel
            # totals, already replicated across all lane positions of that channel:
            # summing cyclic rolls by multiples of `cout` hits exactly the columns
            # sharing (i mod cout).  XLU work, done once per layer.
            s = sum_ref[...]
            q = sq_ref[...]
            tot_s, tot_q = s, q
            for g in range(1, reps):
                tot_s = tot_s + pltpu.roll(s, shift=g * cout, axis=1)
                tot_q = tot_q + pltpu.roll(q, shift=g * cout, axis=1)
            mean = tot_s * inv_count
            # NOTE: E[x^2]-E[x]^2 in f32 can cancel for large |mean|/std; fine at
            # this tolerance, clamp >= 0.
            var = jnp.maximum(tot_q * inv_count - mean * mean, 0.0)
            sc = gamma_ref[...] * lax.rsqrt(var + BN_EPS)
            scale_ref[...] = sc
            shift_ref[...] = beta_ref[...] - mean * sc

        @pl.when(pass_id == 1)
        def _apply():
            y = acc * scale_ref[...] + shift_ref[...]
            sig = pl.reciprocal(1.0 + jnp.exp(-y), approx=True)   # EUP exp + recip
            out_ref[...] = (y * sig).astype(out_ref.dtype)

    return kernel


# --------------------------------------------------------------- wrapper ----
def upsample_block(x, w_pt, b_pt, gamma, beta):
    """One UpsampleBlock. x: [N,H,W,Cin] f32; w_pt: PyTorch layout [Cin,Cout,3,3].
    b_pt (ConvTranspose2d bias) is intentionally unused: a bias added before
    BatchNorm is cancelled exactly by the batch mean."""
    del b_pt
    n, h, w, cin = x.shape
    cout = w_pt.shape[1]
    m = n * h * w
    k4, c4 = 4 * cin, 4 * cout

    # Lane-group factor: pack G spatial rows per kernel row so stores are lane-dense.
    G = 1 if c4 >= LANE else _cdiv(LANE, c4)
    gk4, gc4 = G * k4, G * c4

    # Row tiling in the wide (G-grouped) view, sized by bytes moved per grid step.
    rows_w = _cdiv(m, G)
    bytes_per_row = gk4 * 2 + gc4 * 4          # bf16 patches in + f32 out
    tw_cap = max(16, (TILE_BYTES // bytes_per_row) // 16 * 16)
    tw = min(tw_cap, _round_up(rows_w, 16))
    num_tiles = _cdiv(rows_w, tw)
    rows_w_pad = num_tiles * tw
    m_pad = rows_w_pad * G

    # ---- glue: 4-shift im2col, built directly in bf16 (half the glue traffic).
    xb = x.astype(jnp.bfloat16)
    xp = jnp.pad(xb, ((0, 0), (0, 1), (0, 1), (0, 0)))
    shifts = [xp[:, dh:dh + h, dw:dw + w, :] for dh in (0, 1) for dw in (0, 1)]
    patches = jnp.concatenate(shifts, axis=-1).reshape(m, k4)
    patches = jnp.pad(patches, ((0, m_pad - m), (0, 0)))
    patches_w = patches.reshape(rows_w_pad, gk4)          # free row-major reshape
    # TODO(synk): the 4 shifted copies are still materialized by XLA (~4x input
    # bytes); an in-kernel halo gather over x_pad would remove this.

    # Block-diagonal phase weights: G independent spatial rows per matmul row.
    w_all = _phase_weights(w_pt).astype(jnp.bfloat16)
    if G == 1:
        w_big = w_all
    else:
        w_big = jnp.zeros((gk4, gc4), jnp.bfloat16)
        for g in range(G):
            w_big = w_big.at[g * k4:(g + 1) * k4, g * c4:(g + 1) * c4].set(w_all)

    gamma_w = jnp.tile(gamma.astype(jnp.float32), gc4 // cout).reshape(1, gc4)
    beta_w = jnp.tile(beta.astype(jnp.float32), gc4 // cout).reshape(1, gc4)

    inv_count = 1.0 / (4.0 * m)    # BN count = N * 2H * 2W per channel

    cost = pl.CostEstimate(
        flops=int(2 * 2 * rows_w_pad * gk4 * gc4),                # both passes
        transcendentals=int(rows_w_pad * gc4),                    # exp in pass 1
        bytes_accessed=int(2 * rows_w_pad * gk4 * 2 + gk4 * gc4 * 2
                           + rows_w_pad * gc4 * 4),
    )

    out_w = pl.pallas_call(
        _make_fused_kernel(cout, gc4, inv_count),
        out_shape=jax.ShapeDtypeStruct((rows_w_pad, gc4), jnp.float32),
        grid=(2, num_tiles),
        in_specs=[
            pl.BlockSpec((tw, gk4), lambda p, t: (t, 0)),
            pl.BlockSpec((gk4, gc4), lambda p, t: (0, 0)),   # weights stay resident
            pl.BlockSpec((1, gc4), lambda p, t: (0, 0)),
            pl.BlockSpec((1, gc4), lambda p, t: (0, 0)),
        ],
        # During pass 0 the output block index is pinned to 0 and never written by
        # the kernel, so nothing is flushed to HBM; pass 1 writes every block once.
        out_specs=pl.BlockSpec((tw, gc4), lambda p, t: (t * p, 0)),
        scratch_shapes=[
            pltpu.VMEM((1, gc4), jnp.float32),   # sum accumulator
            pltpu.VMEM((1, gc4), jnp.float32),   # sum-of-squares accumulator
            pltpu.VMEM((1, gc4), jnp.float32),   # BN scale
            pltpu.VMEM((1, gc4), jnp.float32),   # BN shift
        ],
        compiler_params=pltpu.CompilerParams(
            dimension_semantics=("arbitrary", "arbitrary"),
            vmem_limit_bytes=48 * 1024 * 1024,   # safe on v5e/v6e/v7x
        ),
        cost_estimate=cost,
    )(patches_w, w_big, gamma_w, beta_w)

    # ---- un-group lanes, interleave the 4 phases back to NHWC
    # TODO(synk): this stride-2 scatter is XLA reshape/transpose glue.
    y = out_w.reshape(m_pad, c4)[:m]
    y = y.reshape(n, h, w, 2, 2, cout).transpose(0, 1, 3, 2, 4, 5)
    return y.reshape(n, 2 * h, 2 * w, cout)


def init_decoder_params(key, channels):
    """Deterministic synthetic parameters for each UpsampleBlock."""
    params = []
    for i in range(len(channels) - 1):
        cin, cout = channels[i], channels[i + 1]
        key, k1, k2, k3, k4 = jax.random.split(key, 5)
        bound = 1.0 / float(cin * 9) ** 0.5
        w = jax.random.uniform(k1, (cin, cout, 3, 3), jnp.float32, -bound, bound)
        b = jax.random.uniform(k2, (cout,), jnp.float32, -bound, bound)
        gamma = 1.0 + 0.1 * jax.random.normal(k3, (cout,), jnp.float32)
        beta = 0.1 * jax.random.normal(k4, (cout,), jnp.float32)
        params.append((w, b, gamma, beta))
    return params


@jax.jit
def decoder_block(x_nhwc, params):
    for (w, b, g, bt) in params:
        x_nhwc = upsample_block(x_nhwc, w, b, g, bt)
    return x_nhwc


# ---------------- pure-JAX reference (for sanity check) ----------------
def ref_upsample_block(x, w_pt, b_pt, gamma, beta):
    w_hwio = jnp.flip(w_pt, axis=(2, 3)).transpose(2, 3, 0, 1)  # [3,3,Cin,Cout]
    y = lax.conv_general_dilated(
        x, w_hwio, window_strides=(1, 1), padding=((1, 2), (1, 2)),
        lhs_dilation=(2, 2),
        dimension_numbers=("NHWC", "HWIO", "NHWC"))
    y = y + b_pt.reshape(1, 1, 1, -1)
    mean = jnp.mean(y, axis=(0, 1, 2), keepdims=True)
    var = jnp.mean((y - mean) ** 2, axis=(0, 1, 2), keepdims=True)
    y = (y - mean) * lax.rsqrt(var + BN_EPS)
    y = y * gamma.reshape(1, 1, 1, -1) + beta.reshape(1, 1, 1, -1)
    return y * jax.nn.sigmoid(y)


if __name__ == "__main__":
    key = jax.random.PRNGKey(0)
    channels = [6, 8, 4]        # DecoderBlock(channels) -> 2 UpsampleBlocks
    N, H, W = 2, 8, 8

    kx, kp = jax.random.split(key)
    x_nchw = jax.random.normal(kx, (N, channels[0], H, W), jnp.float32)  # PyTorch layout
    x_nhwc = jnp.transpose(x_nchw, (0, 2, 3, 1))                         # kernel layout
    params = init_decoder_params(kp, channels)

    out = decoder_block(x_nhwc, params)
    out = jax.block_until_ready(out)
    assert out.shape == (N, 4 * H, 4 * W, channels[-1])

    # sanity check against an XLA reference of the same math
    ref = x_nhwc
    for (w, b, g, bt) in params:
        ref = ref_upsample_block(ref, w, b, g, bt)
    err = float(jnp.max(jnp.abs(out - ref)))
    assert err < 5e-2, f"max abs error too large: {err}"

    print("KERNEL_OK")
</pallas_src>

<mosaic_0001>
module attributes {stable_mosaic.version = 11 : i64} {
  func.func @kernel(%arg0: i32, %arg1: i32, %arg2: memref<32x96xbf16, #tpu.memory_space<vmem>>, %arg3: memref<96x128xbf16, #tpu.memory_space<vmem>>, %arg4: memref<1x128xf32, #tpu.memory_space<vmem>>, %arg5: memref<1x128xf32, #tpu.memory_space<vmem>>, %arg6: memref<32x128xf32, #tpu.memory_space<vmem>>, %arg7: memref<1x128xf32, #tpu.memory_space<vmem>>, %arg8: memref<1x128xf32, #tpu.memory_space<vmem>>, %arg9: memref<1x128xf32, #tpu.memory_space<vmem>>, %arg10: memref<1x128xf32, #tpu.memory_space<vmem>>) attributes {dimension_semantics = [#tpu.dimension_semantics<arbitrary>, #tpu.dimension_semantics<arbitrary>], iteration_bounds = array<i64: 2, 1>, scalar_prefetch = 0 : i64, scratch_operands = 4 : i64, tpu.core_type = #tpu.core_type<tc>, window_params = [{transform_indices = @transform_0, window_bounds = array<i64: 32, 96>}, {pipeline_mode = #tpu.pipeline_mode<synchronous>, transform_indices = @transform_1, window_bounds = array<i64: 96, 128>}, {pipeline_mode = #tpu.pipeline_mode<synchronous>, transform_indices = @transform_2, window_bounds = array<i64: 1, 128>}, {pipeline_mode = #tpu.pipeline_mode<synchronous>, transform_indices = @transform_3, window_bounds = array<i64: 1, 128>}, {transform_indices = @transform_4, window_bounds = array<i64: 32, 128>}]} {
    %c0_i32 = arith.constant 0 : i32
    %0 = arith.cmpi eq, %arg0, %c0_i32 : i32
    %c0_i32_0 = arith.constant 0 : i32
    %1 = arith.cmpi eq, %arg1, %c0_i32_0 : i32
    %2 = arith.andi %0, %1 : i1
    %3 = arith.extui %2 : i1 to i32
    %c0_i32_1 = arith.constant 0 : i32
    %4 = arith.cmpi ne, %3, %c0_i32_1 : i32
    scf.if %4 {
      %cst_11 = arith.constant 0.000000e+00 : f32
      %19 = vector.broadcast %cst_11 : f32 to vector<1x128xf32>
      %c0_12 = arith.constant 0 : index
      %c0_13 = arith.constant 0 : index
      %20 = vector.load %arg7[%c0_12, %c0_13] : memref<1x128xf32, #tpu.memory_space<vmem>>, vector<1x128xf32>
      tpu.vector_store %arg7[%c0_12, %c0_13], %19 {strides = array<i32>} : memref<1x128xf32, #tpu.memory_space<vmem>>, vector<1x128xf32>,
      %cst_14 = arith.constant 0.000000e+00 : f32
      %21 = vector.broadcast %cst_14 : f32 to vector<1x128xf32>
      %c0_15 = arith.constant 0 : index
      %c0_16 = arith.constant 0 : index
      %22 = vector.load %arg8[%c0_15, %c0_16] : memref<1x128xf32, #tpu.memory_space<vmem>>, vector<1x128xf32>
      tpu.vector_store %arg8[%c0_15, %c0_16], %21 {strides = array<i32>} : memref<1x128xf32, #tpu.memory_space<vmem>>, vector<1x128xf32>,
    } else {
    }
    %c0 = arith.constant 0 : index
    %c0_2 = arith.constant 0 : index
    %5 = vector.load %arg2[%c0, %c0_2] : memref<32x96xbf16, #tpu.memory_space<vmem>>, vector<32x96xbf16>
    %c0_3 = arith.constant 0 : index
    %c0_4 = arith.constant 0 : index
    %6 = vector.load %arg3[%c0_3, %c0_4] : memref<96x128xbf16, #tpu.memory_space<vmem>>, vector<96x128xbf16>
    %cst = arith.constant dense<0.000000e+00> : vector<32x128xf32>
    %7 = tpu.matmul %5, %6, %cst {dimension_numbers = #tpu.dot_dimension_numbers<[1], [0], [0], [1], [0, 0, 1, 1], [], []>} : vector<32x96xbf16>, vector<96x128xbf16>, vector<32x128xf32> -> vector<32x128xf32>
    %c0_i32_5 = arith.constant 0 : i32
    %8 = arith.cmpi eq, %arg0, %c0_i32_5 : i32
    %9 = arith.extui %8 : i1 to i32
    %c0_i32_6 = arith.constant 0 : i32
    %10 = arith.cmpi ne, %9, %c0_i32_6 : i32
    scf.if %10 {
      %c0_11 = arith.constant 0 : index
      %c0_12 = arith.constant 0 : index
      %19 = vector.load %arg7[%c0_11, %c0_12] : memref<1x128xf32, #tpu.memory_space<vmem>>, vector<1x128xf32>
      %cst_13 = arith.constant dense<0.000000e+00> : vector<128xf32>
      %20 = vector.multi_reduction <add>, %7, %cst_13 [0] : vector<32x128xf32> to vector<128xf32>
      %21 = vector.shape_cast %20 : vector<128xf32> to vector<1x128xf32>
      %22 = arith.addf %19, %21 : vector<1x128xf32>
      %c0_14 = arith.constant 0 : index
      %c0_15 = arith.constant 0 : index
      %23 = vector.load %arg7[%c0_14, %c0_15] : memref<1x128xf32, #tpu.memory_space<vmem>>, vector<1x128xf32>
      tpu.vector_store %arg7[%c0_14, %c0_15], %22 {strides = array<i32>} : memref<1x128xf32, #tpu.memory_space<vmem>>, vector<1x128xf32>,
      %c0_16 = arith.constant 0 : index
      %c0_17 = arith.constant 0 : index
      %24 = vector.load %arg8[%c0_16, %c0_17] : memref<1x128xf32, #tpu.memory_space<vmem>>, vector<1x128xf32>
      %25 = arith.mulf %7, %7 : vector<32x128xf32>
      %cst_18 = arith.constant dense<0.000000e+00> : vector<128xf32>
      %26 = vector.multi_reduction <add>, %25, %cst_18 [0] : vector<32x128xf32> to vector<128xf32>
      %27 = vector.shape_cast %26 : vector<128xf32> to vector<1x128xf32>
      %28 = arith.addf %24, %27 : vector<1x128xf32>
      %c0_19 = arith.constant 0 : index
      %c0_20 = arith.constant 0 : index
      %29 = vector.load %arg8[%c0_19, %c0_20] : memref<1x128xf32, #tpu.memory_space<vmem>>, vector<1x128xf32>
      tpu.vector_store %arg8[%c0_19, %c0_20], %28 {strides = array<i32>} : memref<1x128xf32, #tpu.memory_space<vmem>>, vector<1x128xf32>,
    } else {
    }
    %c1_i32 = arith.constant 1 : i32
    %11 = arith.cmpi eq, %arg0, %c1_i32 : i32
    %c0_i32_7 = arith.constant 0 : i32
    %12 = arith.cmpi eq, %arg1, %c0_i32_7 : i32
    %13 = arith.andi %11, %12 : i1
    %14 = arith.extui %13 : i1 to i32
    %c0_i32_8 = arith.constant 0 : i32
    %15 = arith.cmpi ne, %14, %c0_i32_8 : i32
    scf.if %15 {
      %c0_11 = arith.constant 0 : index
      %c0_12 = arith.constant 0 : index
      %19 = vector.load %arg7[%c0_11, %c0_12] : memref<1x128xf32, #tpu.memory_space<vmem>>, vector<1x128xf32>
      %c0_13 = arith.constant 0 : index
      %c0_14 = arith.constant 0 : index
      %20 = vector.load %arg8[%c0_13, %c0_14] : memref<1x128xf32, #tpu.memory_space<vmem>>, vector<1x128xf32>
      %c8_i32 = arith.constant 8 : i32
      %21 = tpu.dynamic_rotate %19 by %c8_i32 dim 1 : vector<1x128xf32>, i32 -> vector<1x128xf32>
      %22 = arith.addf %19, %21 : vector<1x128xf32>
      %c8_i32_15 = arith.constant 8 : i32
      %23 = tpu.dynamic_rotate %20 by %c8_i32_15 dim 1 : vector<1x128xf32>, i32 -> vector<1x128xf32>
      %24 = arith.addf %20, %23 : vector<1x128xf32>
      %c16_i32 = arith.constant 16 : i32
      %25 = tpu.dynamic_rotate %19 by %c16_i32 dim 1 : vector<1x128xf32>, i32 -> vector<1x128xf32>
      %26 = arith.addf %22, %25 : vector<1x128xf32>
      %c16_i32_16 = arith.constant 16 : i32
      %27 = tpu.dynamic_rotate %20 by %c16_i32_16 dim 1 : vector<1x128xf32>, i32 -> vector<1x128xf32>
      %28 = arith.addf %24, %27 : vector<1x128xf32>
      %c24_i32 = arith.constant 24 : i32
      %29 = tpu.dynamic_rotate %19 by %c24_i32 dim 1 : vector<1x128xf32>, i32 -> vector<1x128xf32>
      %30 = arith.addf %26, %29 : vector<1x128xf32>
      %c24_i32_17 = arith.constant 24 : i32
      %31 = tpu.dynamic_rotate %20 by %c24_i32_17 dim 1 : vector<1x128xf32>, i32 -> vector<1x128xf32>
      %32 = arith.addf %28, %31 : vector<1x128xf32>
      %c32_i32 = arith.constant 32 : i32
      %33 = tpu.dynamic_rotate %19 by %c32_i32 dim 1 : vector<1x128xf32>, i32 -> vector<1x128xf32>
      %34 = arith.addf %30, %33 : vector<1x128xf32>
      %c32_i32_18 = arith.constant 32 : i32
      %35 = tpu.dynamic_rotate %20 by %c32_i32_18 dim 1 : vector<1x128xf32>, i32 -> vector<1x128xf32>
      %36 = arith.addf %32, %35 : vector<1x128xf32>
      %c40_i32 = arith.constant 40 : i32
      %37 = tpu.dynamic_rotate %19 by %c40_i32 dim 1 : vector<1x128xf32>, i32 -> vector<1x128xf32>
      %38 = arith.addf %34, %37 : vector<1x128xf32>
      %c40_i32_19 = arith.constant 40 : i32
      %39 = tpu.dynamic_rotate %20 by %c40_i32_19 dim 1 : vector<1x128xf32>, i32 -> vector<1x128xf32>
      %40 = arith.addf %36, %39 : vector<1x128xf32>
      %c48_i32 = arith.constant 48 : i32
      %41 = tpu.dynamic_rotate %19 by %c48_i32 dim 1 : vector<1x128xf32>, i32 -> vector<1x128xf32>
      %42 = arith.addf %38, %41 : vector<1x128xf32>
      %c48_i32_20 = arith.constant 48 : i32
      %43 = tpu.dynamic_rotate %20 by %c48_i32_20 dim 1 : vector<1x128xf32>, i32 -> vector<1x128xf32>
      %44 = arith.addf %40, %43 : vector<1x128xf32>
      %c56_i32 = arith.constant 56 : i32
      %45 = tpu.dynamic_rotate %19 by %c56_i32 dim 1 : vector<1x128xf32>, i32 -> vector<1x128xf32>
      %46 = arith.addf %42, %45 : vector<1x128xf32>
      %c56_i32_21 = arith.constant 56 : i32
      %47 = tpu.dynamic_rotate %20 by %c56_i32_21 dim 1 : vector<1x128xf32>, i32 -> vector<1x128xf32>
      %48 = arith.addf %44, %47 : vector<1x128xf32>
      %c64_i32 = arith.constant 64 : i32
      %49 = tpu.dynamic_rotate %19 by %c64_i32 dim 1 : vector<1x128xf32>, i32 -> vector<1x128xf32>
      %50 = arith.addf %46, %49 : vector<1x128xf32>
      %c64_i32_22 = arith.constant 64 : i32
      %51 = tpu.dynamic_rotate %20 by %c64_i32_22 dim 1 : vector<1x128xf32>, i32 -> vector<1x128xf32>
      %52 = arith.addf %48, %51 : vector<1x128xf32>
      %c72_i32 = arith.constant 72 : i32
      %53 = tpu.dynamic_rotate %19 by %c72_i32 dim 1 : vector<1x128xf32>, i32 -> vector<1x128xf32>
      %54 = arith.addf %50, %53 : vector<1x128xf32>
      %c72_i32_23 = arith.constant 72 : i32
      %55 = tpu.dynamic_rotate %20 by %c72_i32_23 dim 1 : vector<1x128xf32>, i32 -> vector<1x128xf32>
      %56 = arith.addf %52, %55 : vector<1x128xf32>
      %c80_i32 = arith.constant 80 : i32
      %57 = tpu.dynamic_rotate %19 by %c80_i32 dim 1 : vector<1x128xf32>, i32 -> vector<1x128xf32>
      %58 = arith.addf %54, %57 : vector<1x128xf32>
      %c80_i32_24 = arith.constant 80 : i32
      %59 = tpu.dynamic_rotate %20 by %c80_i32_24 dim 1 : vector<1x128xf32>, i32 -> vector<1x128xf32>
      %60 = arith.addf %56, %59 : vector<1x128xf32>
      %c88_i32 = arith.constant 88 : i32
      %61 = tpu.dynamic_rotate %19 by %c88_i32 dim 1 : vector<1x128xf32>, i32 -> vector<1x128xf32>
      %62 = arith.addf %58, %61 : vector<1x128xf32>
      %c88_i32_25 = arith.constant 88 : i32
      %63 = tpu.dynamic_rotate %20 by %c88_i32_25 dim 1 : vector<1x128xf32>, i32 -> vector<1x128xf32>
      %64 = arith.addf %60, %63 : vector<1x128xf32>
      %c96_i32 = arith.constant 96 : i32
      %65 = tpu.dynamic_rotate %19 by %c96_i32 dim 1 : vector<1x128xf32>, i32 -> vector<1x128xf32>
      %66 = arith.addf %62, %65 : vector<1x128xf32>
      %c96_i32_26 = arith.constant 96 : i32
      %67 = tpu.dynamic_rotate %20 by %c96_i32_26 dim 1 : vector<1x128xf32>, i32 -> vector<1x128xf32>
      %68 = arith.addf %64, %67 : vector<1x128xf32>
      %c104_i32 = arith.constant 104 : i32
      %69 = tpu.dynamic_rotate %19 by %c104_i32 dim 1 : vector<1x128xf32>, i32 -> vector<1x128xf32>
      %70 = arith.addf %66, %69 : vector<1x128xf32>
      %c104_i32_27 = arith.constant 104 : i32
      %71 = tpu.dynamic_rotate %20 by %c104_i32_27 dim 1 : vector<1x128xf32>, i32 -> vector<1x128xf32>
      %72 = arith.addf %68, %71 : vector<1x128xf32>
      %c112_i32 = arith.constant 112 : i32
      %73 = tpu.dynamic_rotate %19 by %c112_i32 dim 1 : vector<1x128xf32>, i32 -> vector<1x128xf32>
      %74 = arith.addf %70, %73 : vector<1x128xf32>
      %c112_i32_28 = arith.constant 112 : i32
      %75 = tpu.dynamic_rotate %20 by %c112_i32_28 dim 1 : vector<1x128xf32>, i32 -> vector<1x128xf32>
      %76 = arith.addf %72, %75 : vector<1x128xf32>
      %c120_i32 = arith.constant 120 : i32
      %77 = tpu.dynamic_rotate %19 by %c120_i32 dim 1 : vector<1x128xf32>, i32 -> vector<1x128xf32>
      %78 = arith.addf %74, %77 : vector<1x128xf32>
      %c120_i32_29 = arith.constant 120 : i32
      %79 = tpu.dynamic_rotate %20 by %c120_i32_29 dim 1 : vector<1x128xf32>, i32 -> vector<1x128xf32>
      %80 = arith.addf %76, %79 : vector<1x128xf32>
      %cst_30 = arith.constant 0.001953125 : f32
      %81 = vector.broadcast %cst_30 : f32 to vector<1x128xf32>
      %82 = arith.mulf %78, %81 : vector<1x128xf32>
      %cst_31 = arith.constant 0.001953125 : f32
      %83 = vector.broadcast %cst_31 : f32 to vector<1x128xf32>
      %84 = arith.mulf %80, %83 : vector<1x128xf32>
      %85 = arith.mulf %82, %82 : vector<1x128xf32>
      %86 = arith.subf %84, %85 : vector<1x128xf32>
      %cst_32 = arith.constant 0.000000e+00 : f32
      %87 = vector.broadcast %cst_32 : f32 to vector<1x128xf32>
      %88 = arith.maximumf %86, %87 : vector<1x128xf32>
      %c0_33 = arith.constant 0 : index
      %c0_34 = arith.constant 0 : index
      %89 = vector.load %arg4[%c0_33, %c0_34] : memref<1x128xf32, #tpu.memory_space<vmem>>, vector<1x128xf32>
      %cst_35 = arith.constant 9.99999974E-6 : f32
      %90 = vector.broadcast %cst_35 : f32 to vector<1x128xf32>
      %91 = arith.addf %88, %90 : vector<1x128xf32>
      %92 = math.rsqrt %91 : vector<1x128xf32>
      %93 = arith.mulf %89, %92 : vector<1x128xf32>
      %c0_36 = arith.constant 0 : index
      %c0_37 = arith.constant 0 : index
      %94 = vector.load %arg9[%c0_36, %c0_37] : memref<1x128xf32, #tpu.memory_space<vmem>>, vector<1x128xf32>
      tpu.vector_store %arg9[%c0_36, %c0_37], %93 {strides = array<i32>} : memref<1x128xf32, #tpu.memory_space<vmem>>, vector<1x128xf32>,
      %c0_38 = arith.constant 0 : index
      %c0_39 = arith.constant 0 : index
      %95 = vector.load %arg5[%c0_38, %c0_39] : memref<1x128xf32, #tpu.memory_space<vmem>>, vector<1x128xf32>
      %96 = arith.mulf %82, %93 : vector<1x128xf32>
      %97 = arith.subf %95, %96 : vector<1x128xf32>
      %c0_40 = arith.constant 0 : index
      %c0_41 = arith.constant 0 : index
      %98 = vector.load %arg10[%c0_40, %c0_41] : memref<1x128xf32, #tpu.memory_space<vmem>>, vector<1x128xf32>
      tpu.vector_store %arg10[%c0_40, %c0_41], %97 {strides = array<i32>} : memref<1x128xf32, #tpu.memory_space<vmem>>, vector<1x128xf32>,
    } else {
    }
    %c1_i32_9 = arith.constant 1 : i32
    %16 = arith.cmpi eq, %arg0, %c1_i32_9 : i32
    %17 = arith.extui %16 : i1 to i32
    %c0_i32_10 = arith.constant 0 : i32
    %18 = arith.cmpi ne, %17, %c0_i32_10 : i32
    scf.if %18 {
      %c0_11 = arith.constant 0 : index
      %c0_12 = arith.constant 0 : index
      %19 = vector.load %arg9[%c0_11, %c0_12] : memref<1x128xf32, #tpu.memory_space<vmem>>, vector<1x128xf32>
      %20 = vector.broadcast %19 : vector<1x128xf32> to vector<32x128xf32>
      %21 = arith.mulf %7, %20 : vector<32x128xf32>
      %c0_13 = arith.constant 0 : index
      %c0_14 = arith.constant 0 : index
      %22 = vector.load %arg10[%c0_13, %c0_14] : memref<1x128xf32, #tpu.memory_space<vmem>>, vector<1x128xf32>
      %23 = vector.broadcast %22 : vector<1x128xf32> to vector<32x128xf32>
      %24 = arith.addf %21, %23 : vector<32x128xf32>
      %cst_15 = arith.constant 0.000000e+00 : f32
      %25 = vector.broadcast %cst_15 : f32 to vector<32x128xf32>
      %26 = arith.subf %25, %24 : vector<32x128xf32>
      %27 = math.exp %26 : vector<32x128xf32>
      %cst_16 = arith.constant 1.000000e+00 : f32
      %28 = vector.broadcast %cst_16 : f32 to vector<32x128xf32>
      %29 = arith.addf %28, %27 : vector<32x128xf32>
      %30 = tpu.reciprocal %29 {approx = true} : vector<32x128xf32> -> vector<32x128xf32>
      %31 = arith.mulf %24, %30 : vector<32x128xf32>
      %c0_17 = arith.constant 0 : index
      %c0_18 = arith.constant 0 : index
      %32 = vector.load %arg6[%c0_17, %c0_18] : memref<32x128xf32, #tpu.memory_space<vmem>>, vector<32x128xf32>
      tpu.vector_store %arg6[%c0_17, %c0_18], %31 {strides = array<i32>} : memref<32x128xf32, #tpu.memory_space<vmem>>, vector<32x128xf32>,
    } else {
    }
    return
  }
  func.func @transform_0(%arg0: i32, %arg1: i32) -> (i32, i32) {
    %c0_i32 = arith.constant 0 : i32
    %c0_i32_0 = arith.constant 0 : i32
    return %arg1, %c0_i32 : i32, i32
  }
  func.func @transform_1(%arg0: i32, %arg1: i32) -> (i32, i32) {
    %c0_i32 = arith.constant 0 : i32
    %c0_i32_0 = arith.constant 0 : i32
    %c0_i32_1 = arith.constant 0 : i32
    return %c0_i32, %c0_i32_0 : i32, i32
  }
  func.func @transform_2(%arg0: i32, %arg1: i32) -> (i32, i32) {
    %c0_i32 = arith.constant 0 : i32
    %c0_i32_0 = arith.constant 0 : i32
    %c0_i32_1 = arith.constant 0 : i32
    return %c0_i32, %c0_i32_0 : i32, i32
  }
  func.func @transform_3(%arg0: i32, %arg1: i32) -> (i32, i32) {
    %c0_i32 = arith.constant 0 : i32
    %c0_i32_0 = arith.constant 0 : i32
    %c0_i32_1 = arith.constant 0 : i32
    return %c0_i32, %c0_i32_0 : i32, i32
  }
  func.func @transform_4(%arg0: i32, %arg1: i32) -> (i32, i32) {
    %0 = arith.muli %arg1, %arg0 : i32
    %c0_i32 = arith.constant 0 : i32
    %c0_i32_0 = arith.constant 0 : i32
    return %0, %c0_i32 : i32, i32
  }
}

module attributes {stable_mosaic.version = 11 : i64} {
  func.func @kernel(%arg0: i32, %arg1: i32, %arg2: memref<64x256xbf16, #tpu.memory_space<vmem>>, %arg3: memref<256x128xbf16, #tpu.memory_space<vmem>>, %arg4: memref<1x128xf32, #tpu.memory_space<vmem>>, %arg5: memref<1x128xf32, #tpu.memory_space<vmem>>, %arg6: memref<64x128xf32, #tpu.memory_space<vmem>>, %arg7: memref<1x128xf32, #tpu.memory_space<vmem>>, %arg8: memref<1x128xf32, #tpu.memory_space<vmem>>, %arg9: memref<1x128xf32, #tpu.memory_space<vmem>>, %arg10: memref<1x128xf32, #tpu.memory_space<vmem>>) attributes {dimension_semantics = [#tpu.dimension_semantics<arbitrary>, #tpu.dimension_semantics<arbitrary>], iteration_bounds = array<i64: 2, 1>, scalar_prefetch = 0 : i64, scratch_operands = 4 : i64, tpu.core_type = #tpu.core_type<tc>, window_params = [{transform_indices = @transform_0, window_bounds = array<i64: 64, 256>}, {pipeline_mode = #tpu.pipeline_mode<synchronous>, transform_indices = @transform_1, window_bounds = array<i64: 256, 128>}, {pipeline_mode = #tpu.pipeline_mode<synchronous>, transform_indices = @transform_2, window_bounds = array<i64: 1, 128>}, {pipeline_mode = #tpu.pipeline_mode<synchronous>, transform_indices = @transform_3, window_bounds = array<i64: 1, 128>}, {transform_indices = @transform_4, window_bounds = array<i64: 64, 128>}]} {
    %c0_i32 = arith.constant 0 : i32
    %0 = arith.cmpi eq, %arg0, %c0_i32 : i32
    %c0_i32_0 = arith.constant 0 : i32
    %1 = arith.cmpi eq, %arg1, %c0_i32_0 : i32
    %2 = arith.andi %0, %1 : i1
    %3 = arith.extui %2 : i1 to i32
    %c0_i32_1 = arith.constant 0 : i32
    %4 = arith.cmpi ne, %3, %c0_i32_1 : i32
    scf.if %4 {
      %cst_11 = arith.constant 0.000000e+00 : f32
      %19 = vector.broadcast %cst_11 : f32 to vector<1x128xf32>
      %c0_12 = arith.constant 0 : index
      %c0_13 = arith.constant 0 : index
      %20 = vector.load %arg7[%c0_12, %c0_13] : memref<1x128xf32, #tpu.memory_space<vmem>>, vector<1x128xf32>
      tpu.vector_store %arg7[%c0_12, %c0_13], %19 {strides = array<i32>} : memref<1x128xf32, #tpu.memory_space<vmem>>, vector<1x128xf32>,
      %cst_14 = arith.constant 0.000000e+00 : f32
      %21 = vector.broadcast %cst_14 : f32 to vector<1x128xf32>
      %c0_15 = arith.constant 0 : index
      %c0_16 = arith.constant 0 : index
      %22 = vector.load %arg8[%c0_15, %c0_16] : memref<1x128xf32, #tpu.memory_space<vmem>>, vector<1x128xf32>
      tpu.vector_store %arg8[%c0_15, %c0_16], %21 {strides = array<i32>} : memref<1x128xf32, #tpu.memory_space<vmem>>, vector<1x128xf32>,
    } else {
    }
    %c0 = arith.constant 0 : index
    %c0_2 = arith.constant 0 : index
    %5 = vector.load %arg2[%c0, %c0_2] : memref<64x256xbf16, #tpu.memory_space<vmem>>, vector<64x256xbf16>
    %c0_3 = arith.constant 0 : index
    %c0_4 = arith.constant 0 : index
    %6 = vector.load %arg3[%c0_3, %c0_4] : memref<256x128xbf16, #tpu.memory_space<vmem>>, vector<256x128xbf16>
    %cst = arith.constant dense<0.000000e+00> : vector<64x128xf32>
    %7 = tpu.matmul %5, %6, %cst {dimension_numbers = #tpu.dot_dimension_numbers<[1], [0], [0], [1], [0, 0, 1, 1], [], []>} : vector<64x256xbf16>, vector<256x128xbf16>, vector<64x128xf32> -> vector<64x128xf32>
    %c0_i32_5 = arith.constant 0 : i32
    %8 = arith.cmpi eq, %arg0, %c0_i32_5 : i32
    %9 = arith.extui %8 : i1 to i32
    %c0_i32_6 = arith.constant 0 : i32
    %10 = arith.cmpi ne, %9, %c0_i32_6 : i32
    scf.if %10 {
      %c0_11 = arith.constant 0 : index
      %c0_12 = arith.constant 0 : index
      %19 = vector.load %arg7[%c0_11, %c0_12] : memref<1x128xf32, #tpu.memory_space<vmem>>, vector<1x128xf32>
      %cst_13 = arith.constant dense<0.000000e+00> : vector<128xf32>
      %20 = vector.multi_reduction <add>, %7, %cst_13 [0] : vector<64x128xf32> to vector<128xf32>
      %21 = vector.shape_cast %20 : vector<128xf32> to vector<1x128xf32>
      %22 = arith.addf %19, %21 : vector<1x128xf32>
      %c0_14 = arith.constant 0 : index
      %c0_15 = arith.constant 0 : index
      %23 = vector.load %arg7[%c0_14, %c0_15] : memref<1x128xf32, #tpu.memory_space<vmem>>, vector<1x128xf32>
      tpu.vector_store %arg7[%c0_14, %c0_15], %22 {strides = array<i32>} : memref<1x128xf32, #tpu.memory_space<vmem>>, vector<1x128xf32>,
      %c0_16 = arith.constant 0 : index
      %c0_17 = arith.constant 0 : index
      %24 = vector.load %arg8[%c0_16, %c0_17] : memref<1x128xf32, #tpu.memory_space<vmem>>, vector<1x128xf32>
      %25 = arith.mulf %7, %7 : vector<64x128xf32>
      %cst_18 = arith.constant dense<0.000000e+00> : vector<128xf32>
      %26 = vector.multi_reduction <add>, %25, %cst_18 [0] : vector<64x128xf32> to vector<128xf32>
      %27 = vector.shape_cast %26 : vector<128xf32> to vector<1x128xf32>
      %28 = arith.addf %24, %27 : vector<1x128xf32>
      %c0_19 = arith.constant 0 : index
      %c0_20 = arith.constant 0 : index
      %29 = vector.load %arg8[%c0_19, %c0_20] : memref<1x128xf32, #tpu.memory_space<vmem>>, vector<1x128xf32>
      tpu.vector_store %arg8[%c0_19, %c0_20], %28 {strides = array<i32>} : memref<1x128xf32, #tpu.memory_space<vmem>>, vector<1x128xf32>,
    } else {
    }
    %c1_i32 = arith.constant 1 : i32
    %11 = arith.cmpi eq, %arg0, %c1_i32 : i32
    %c0_i32_7 = arith.constant 0 : i32
    %12 = arith.cmpi eq, %arg1, %c0_i32_7 : i32
    %13 = arith.andi %11, %12 : i1
    %14 = arith.extui %13 : i1 to i32
    %c0_i32_8 = arith.constant 0 : i32
    %15 = arith.cmpi ne, %14, %c0_i32_8 : i32
    scf.if %15 {
      %c0_11 = arith.constant 0 : index
      %c0_12 = arith.constant 0 : index
      %19 = vector.load %arg7[%c0_11, %c0_12] : memref<1x128xf32, #tpu.memory_space<vmem>>, vector<1x128xf32>
      %c0_13 = arith.constant 0 : index
      %c0_14 = arith.constant 0 : index
      %20 = vector.load %arg8[%c0_13, %c0_14] : memref<1x128xf32, #tpu.memory_space<vmem>>, vector<1x128xf32>
      %c4_i32 = arith.constant 4 : i32
      %21 = tpu.dynamic_rotate %19 by %c4_i32 dim 1 : vector<1x128xf32>, i32 -> vector<1x128xf32>
      %22 = arith.addf %19, %21 : vector<1x128xf32>
      %c4_i32_15 = arith.constant 4 : i32
      %23 = tpu.dynamic_rotate %20 by %c4_i32_15 dim 1 : vector<1x128xf32>, i32 -> vector<1x128xf32>
      %24 = arith.addf %20, %23 : vector<1x128xf32>
      %c8_i32 = arith.constant 8 : i32
      %25 = tpu.dynamic_rotate %19 by %c8_i32 dim 1 : vector<1x128xf32>, i32 -> vector<1x128xf32>
      %26 = arith.addf %22, %25 : vector<1x128xf32>
      %c8_i32_16 = arith.constant 8 : i32
      %27 = tpu.dynamic_rotate %20 by %c8_i32_16 dim 1 : vector<1x128xf32>, i32 -> vector<1x128xf32>
      %28 = arith.addf %24, %27 : vector<1x128xf32>
      %c12_i32 = arith.constant 12 : i32
      %29 = tpu.dynamic_rotate %19 by %c12_i32 dim 1 : vector<1x128xf32>, i32 -> vector<1x128xf32>
      %30 = arith.addf %26, %29 : vector<1x128xf32>
      %c12_i32_17 = arith.constant 12 : i32
      %31 = tpu.dynamic_rotate %20 by %c12_i32_17 dim 1 : vector<1x128xf32>, i32 -> vector<1x128xf32>
      %32 = arith.addf %28, %31 : vector<1x128xf32>
      %c16_i32 = arith.constant 16 : i32
      %33 = tpu.dynamic_rotate %19 by %c16_i32 dim 1 : vector<1x128xf32>, i32 -> vector<1x128xf32>
      %34 = arith.addf %30, %33 : vector<1x128xf32>
      %c16_i32_18 = arith.constant 16 : i32
      %35 = tpu.dynamic_rotate %20 by %c16_i32_18 dim 1 : vector<1x128xf32>, i32 -> vector<1x128xf32>
      %36 = arith.addf %32, %35 : vector<1x128xf32>
      %c20_i32 = arith.constant 20 : i32
      %37 = tpu.dynamic_rotate %19 by %c20_i32 dim 1 : vector<1x128xf32>, i32 -> vector<1x128xf32>
      %38 = arith.addf %34, %37 : vector<1x128xf32>
      %c20_i32_19 = arith.constant 20 : i32
      %39 = tpu.dynamic_rotate %20 by %c20_i32_19 dim 1 : vector<1x128xf32>, i32 -> vector<1x128xf32>
      %40 = arith.addf %36, %39 : vector<1x128xf32>
      %c24_i32 = arith.constant 24 : i32
      %41 = tpu.dynamic_rotate %19 by %c24_i32 dim 1 : vector<1x128xf32>, i32 -> vector<1x128xf32>
      %42 = arith.addf %38, %41 : vector<1x128xf32>
      %c24_i32_20 = arith.constant 24 : i32
      %43 = tpu.dynamic_rotate %20 by %c24_i32_20 dim 1 : vector<1x128xf32>, i32 -> vector<1x128xf32>
      %44 = arith.addf %40, %43 : vector<1x128xf32>
      %c28_i32 = arith.constant 28 : i32
      %45 = tpu.dynamic_rotate %19 by %c28_i32 dim 1 : vector<1x128xf32>, i32 -> vector<1x128xf32>
      %46 = arith.addf %42, %45 : vector<1x128xf32>
      %c28_i32_21 = arith.constant 28 : i32
      %47 = tpu.dynamic_rotate %20 by %c28_i32_21 dim 1 : vector<1x128xf32>, i32 -> vector<1x128xf32>
      %48 = arith.addf %44, %47 : vector<1x128xf32>
      %c32_i32 = arith.constant 32 : i32
      %49 = tpu.dynamic_rotate %19 by %c32_i32 dim 1 : vector<1x128xf32>, i32 -> vector<1x128xf32>
      %50 = arith.addf %46, %49 : vector<1x128xf32>
      %c32_i32_22 = arith.constant 32 : i32
      %51 = tpu.dynamic_rotate %20 by %c32_i32_22 dim 1 : vector<1x128xf32>, i32 -> vector<1x128xf32>
      %52 = arith.addf %48, %51 : vector<1x128xf32>
      %c36_i32 = arith.constant 36 : i32
      %53 = tpu.dynamic_rotate %19 by %c36_i32 dim 1 : vector<1x128xf32>, i32 -> vector<1x128xf32>
      %54 = arith.addf %50, %53 : vector<1x128xf32>
      %c36_i32_23 = arith.constant 36 : i32
      %55 = tpu.dynamic_rotate %20 by %c36_i32_23 dim 1 : vector<1x128xf32>, i32 -> vector<1x128xf32>
      %56 = arith.addf %52, %55 : vector<1x128xf32>
      %c40_i32 = arith.constant 40 : i32
      %57 = tpu.dynamic_rotate %19 by %c40_i32 dim 1 : vector<1x128xf32>, i32 -> vector<1x128xf32>
      %58 = arith.addf %54, %57 : vector<1x128xf32>
      %c40_i32_24 = arith.constant 40 : i32
      %59 = tpu.dynamic_rotate %20 by %c40_i32_24 dim 1 : vector<1x128xf32>, i32 -> vector<1x128xf32>
      %60 = arith.addf %56, %59 : vector<1x128xf32>
      %c44_i32 = arith.constant 44 : i32
      %61 = tpu.dynamic_rotate %19 by %c44_i32 dim 1 : vector<1x128xf32>, i32 -> vector<1x128xf32>
      %62 = arith.addf %58, %61 : vector<1x128xf32>
      %c44_i32_25 = arith.constant 44 : i32
      %63 = tpu.dynamic_rotate %20 by %c44_i32_25 dim 1 : vector<1x128xf32>, i32 -> vector<1x128xf32>
      %64 = arith.addf %60, %63 : vector<1x128xf32>
      %c48_i32 = arith.constant 48 : i32
      %65 = tpu.dynamic_rotate %19 by %c48_i32 dim 1 : vector<1x128xf32>, i32 -> vector<1x128xf32>
      %66 = arith.addf %62, %65 : vector<1x128xf32>
      %c48_i32_26 = arith.constant 48 : i32
      %67 = tpu.dynamic_rotate %20 by %c48_i32_26 dim 1 : vector<1x128xf32>, i32 -> vector<1x128xf32>
      %68 = arith.addf %64, %67 : vector<1x128xf32>
      %c52_i32 = arith.constant 52 : i32
      %69 = tpu.dynamic_rotate %19 by %c52_i32 dim 1 : vector<1x128xf32>, i32 -> vector<1x128xf32>
      %70 = arith.addf %66, %69 : vector<1x128xf32>
      %c52_i32_27 = arith.constant 52 : i32
      %71 = tpu.dynamic_rotate %20 by %c52_i32_27 dim 1 : vector<1x128xf32>, i32 -> vector<1x128xf32>
      %72 = arith.addf %68, %71 : vector<1x128xf32>
      %c56_i32 = arith.constant 56 : i32
      %73 = tpu.dynamic_rotate %19 by %c56_i32 dim 1 : vector<1x128xf32>, i32 -> vector<1x128xf32>
      %74 = arith.addf %70, %73 : vector<1x128xf32>
      %c56_i32_28 = arith.constant 56 : i32
      %75 = tpu.dynamic_rotate %20 by %c56_i32_28 dim 1 : vector<1x128xf32>, i32 -> vector<1x128xf32>
      %76 = arith.addf %72, %75 : vector<1x128xf32>
      %c60_i32 = arith.constant 60 : i32
      %77 = tpu.dynamic_rotate %19 by %c60_i32 dim 1 : vector<1x128xf32>, i32 -> vector<1x128xf32>
      %78 = arith.addf %74, %77 : vector<1x128xf32>
      %c60_i32_29 = arith.constant 60 : i32
      %79 = tpu.dynamic_rotate %20 by %c60_i32_29 dim 1 : vector<1x128xf32>, i32 -> vector<1x128xf32>
      %80 = arith.addf %76, %79 : vector<1x128xf32>
      %c64_i32 = arith.constant 64 : i32
      %81 = tpu.dynamic_rotate %19 by %c64_i32 dim 1 : vector<1x128xf32>, i32 -> vector<1x128xf32>
      %82 = arith.addf %78, %81 : vector<1x128xf32>
      %c64_i32_30 = arith.constant 64 : i32
      %83 = tpu.dynamic_rotate %20 by %c64_i32_30 dim 1 : vector<1x128xf32>, i32 -> vector<1x128xf32>
      %84 = arith.addf %80, %83 : vector<1x128xf32>
      %c68_i32 = arith.constant 68 : i32
      %85 = tpu.dynamic_rotate %19 by %c68_i32 dim 1 : vector<1x128xf32>, i32 -> vector<1x128xf32>
      %86 = arith.addf %82, %85 : vector<1x128xf32>
      %c68_i32_31 = arith.constant 68 : i32
      %87 = tpu.dynamic_rotate %20 by %c68_i32_31 dim 1 : vector<1x128xf32>, i32 -> vector<1x128xf32>
      %88 = arith.addf %84, %87 : vector<1x128xf32>
      %c72_i32 = arith.constant 72 : i32
      %89 = tpu.dynamic_rotate %19 by %c72_i32 dim 1 : vector<1x128xf32>, i32 -> vector<1x128xf32>
      %90 = arith.addf %86, %89 : vector<1x128xf32>
      %c72_i32_32 = arith.constant 72 : i32
      %91 = tpu.dynamic_rotate %20 by %c72_i32_32 dim 1 : vector<1x128xf32>, i32 -> vector<1x128xf32>
      %92 = arith.addf %88, %91 : vector<1x128xf32>
      %c76_i32 = arith.constant 76 : i32
      %93 = tpu.dynamic_rotate %19 by %c76_i32 dim 1 : vector<1x128xf32>, i32 -> vector<1x128xf32>
      %94 = arith.addf %90, %93 : vector<1x128xf32>
      %c76_i32_33 = arith.constant 76 : i32
      %95 = tpu.dynamic_rotate %20 by %c76_i32_33 dim 1 : vector<1x128xf32>, i32 -> vector<1x128xf32>
      %96 = arith.addf %92, %95 : vector<1x128xf32>
      %c80_i32 = arith.constant 80 : i32
      %97 = tpu.dynamic_rotate %19 by %c80_i32 dim 1 : vector<1x128xf32>, i32 -> vector<1x128xf32>
      %98 = arith.addf %94, %97 : vector<1x128xf32>
      %c80_i32_34 = arith.constant 80 : i32
      %99 = tpu.dynamic_rotate %20 by %c80_i32_34 dim 1 : vector<1x128xf32>, i32 -> vector<1x128xf32>
      %100 = arith.addf %96, %99 : vector<1x128xf32>
      %c84_i32 = arith.constant 84 : i32
      %101 = tpu.dynamic_rotate %19 by %c84_i32 dim 1 : vector<1x128xf32>, i32 -> vector<1x128xf32>
      %102 = arith.addf %98, %101 : vector<1x128xf32>
      %c84_i32_35 = arith.constant 84 : i32
      %103 = tpu.dynamic_rotate %20 by %c84_i32_35 dim 1 : vector<1x128xf32>, i32 -> vector<1x128xf32>
      %104 = arith.addf %100, %103 : vector<1x128xf32>
      %c88_i32 = arith.constant 88 : i32
      %105 = tpu.dynamic_rotate %19 by %c88_i32 dim 1 : vector<1x128xf32>, i32 -> vector<1x128xf32>
      %106 = arith.addf %102, %105 : vector<1x128xf32>
      %c88_i32_36 = arith.constant 88 : i32
      %107 = tpu.dynamic_rotate %20 by %c88_i32_36 dim 1 : vector<1x128xf32>, i32 -> vector<1x128xf32>
      %108 = arith.addf %104, %107 : vector<1x128xf32>
      %c92_i32 = arith.constant 92 : i32
      %109 = tpu.dynamic_rotate %19 by %c92_i32 dim 1 : vector<1x128xf32>, i32 -> vector<1x128xf32>
      %110 = arith.addf %106, %109 : vector<1x128xf32>
      %c92_i32_37 = arith.constant 92 : i32
      %111 = tpu.dynamic_rotate %20 by %c92_i32_37 dim 1 : vector<1x128xf32>, i32 -> vector<1x128xf32>
      %112 = arith.addf %108, %111 : vector<1x128xf32>
      %c96_i32 = arith.constant 96 : i32
      %113 = tpu.dynamic_rotate %19 by %c96_i32 dim 1 : vector<1x128xf32>, i32 -> vector<1x128xf32>
      %114 = arith.addf %110, %113 : vector<1x128xf32>
      %c96_i32_38 = arith.constant 96 : i32
      %115 = tpu.dynamic_rotate %20 by %c96_i32_38 dim 1 : vector<1x128xf32>, i32 -> vector<1x128xf32>
      %116 = arith.addf %112, %115 : vector<1x128xf32>
      %c100_i32 = arith.constant 100 : i32
      %117 = tpu.dynamic_rotate %19 by %c100_i32 dim 1 : vector<1x128xf32>, i32 -> vector<1x128xf32>
      %118 = arith.addf %114, %117 : vector<1x128xf32>
      %c100_i32_39 = arith.constant 100 : i32
      %119 = tpu.dynamic_rotate %20 by %c100_i32_39 dim 1 : vector<1x128xf32>, i32 -> vector<1x128xf32>
      %120 = arith.addf %116, %119 : vector<1x128xf32>
      %c104_i32 = arith.constant 104 : i32
      %121 = tpu.dynamic_rotate %19 by %c104_i32 dim 1 : vector<1x128xf32>, i32 -> vector<1x128xf32>
      %122 = arith.addf %118, %121 : vector<1x128xf32>
      %c104_i32_40 = arith.constant 104 : i32
      %123 = tpu.dynamic_rotate %20 by %c104_i32_40 dim 1 : vector<1x128xf32>, i32 -> vector<1x128xf32>
      %124 = arith.addf %120, %123 : vector<1x128xf32>
      %c108_i32 = arith.constant 108 : i32
      %125 = tpu.dynamic_rotate %19 by %c108_i32 dim 1 : vector<1x128xf32>, i32 -> vector<1x128xf32>
      %126 = arith.addf %122, %125 : vector<1x128xf32>
      %c108_i32_41 = arith.constant 108 : i32
      %127 = tpu.dynamic_rotate %20 by %c108_i32_41 dim 1 : vector<1x128xf32>, i32 -> vector<1x128xf32>
      %128 = arith.addf %124, %127 : vector<1x128xf32>
      %c112_i32 = arith.constant 112 : i32
      %129 = tpu.dynamic_rotate %19 by %c112_i32 dim 1 : vector<1x128xf32>, i32 -> vector<1x128xf32>
      %130 = arith.addf %126, %129 : vector<1x128xf32>
      %c112_i32_42 = arith.constant 112 : i32
      %131 = tpu.dynamic_rotate %20 by %c112_i32_42 dim 1 : vector<1x128xf32>, i32 -> vector<1x128xf32>
      %132 = arith.addf %128, %131 : vector<1x128xf32>
      %c116_i32 = arith.constant 116 : i32
      %133 = tpu.dynamic_rotate %19 by %c116_i32 dim 1 : vector<1x128xf32>, i32 -> vector<1x128xf32>
      %134 = arith.addf %130, %133 : vector<1x128xf32>
      %c116_i32_43 = arith.constant 116 : i32
      %135 = tpu.dynamic_rotate %20 by %c116_i32_43 dim 1 : vector<1x128xf32>, i32 -> vector<1x128xf32>
      %136 = arith.addf %132, %135 : vector<1x128xf32>
      %c120_i32 = arith.constant 120 : i32
      %137 = tpu.dynamic_rotate %19 by %c120_i32 dim 1 : vector<1x128xf32>, i32 -> vector<1x128xf32>
      %138 = arith.addf %134, %137 : vector<1x128xf32>
      %c120_i32_44 = arith.constant 120 : i32
      %139 = tpu.dynamic_rotate %20 by %c120_i32_44 dim 1 : vector<1x128xf32>, i32 -> vector<1x128xf32>
      %140 = arith.addf %136, %139 : vector<1x128xf32>
      %c124_i32 = arith.constant 124 : i32
      %141 = tpu.dynamic_rotate %19 by %c124_i32 dim 1 : vector<1x128xf32>, i32 -> vector<1x128xf32>
      %142 = arith.addf %138, %141 : vector<1x128xf32>
      %c124_i32_45 = arith.constant 124 : i32
      %143 = tpu.dynamic_rotate %20 by %c124_i32_45 dim 1 : vector<1x128xf32>, i32 -> vector<1x128xf32>
      %144 = arith.addf %140, %143 : vector<1x128xf32>
      %cst_46 = arith.constant 4.8828125E-4 : f32
      %145 = vector.broadcast %cst_46 : f32 to vector<1x128xf32>
      %146 = arith.mulf %142, %145 : vector<1x128xf32>
      %cst_47 = arith.constant 4.8828125E-4 : f32
      %147 = vector.broadcast %cst_47 : f32 to vector<1x128xf32>
      %148 = arith.mulf %144, %147 : vector<1x128xf32>
      %149 = arith.mulf %146, %146 : vector<1x128xf32>
      %150 = arith.subf %148, %149 : vector<1x128xf32>
      %cst_48 = arith.constant 0.000000e+00 : f32
      %151 = vector.broadcast %cst_48 : f32 to vector<1x128xf32>
      %152 = arith.maximumf %150, %151 : vector<1x128xf32>
      %c0_49 = arith.constant 0 : index
      %c0_50 = arith.constant 0 : index
      %153 = vector.load %arg4[%c0_49, %c0_50] : memref<1x128xf32, #tpu.memory_space<vmem>>, vector<1x128xf32>
      %cst_51 = arith.constant 9.99999974E-6 : f32
      %154 = vector.broadcast %cst_51 : f32 to vector<1x128xf32>
      %155 = arith.addf %152, %154 : vector<1x128xf32>
      %156 = math.rsqrt %155 : vector<1x128xf32>
      %157 = arith.mulf %153, %156 : vector<1x128xf32>
      %c0_52 = arith.constant 0 : index
      %c0_53 = arith.constant 0 : index
      %158 = vector.load %arg9[%c0_52, %c0_53] : memref<1x128xf32, #tpu.memory_space<vmem>>, vector<1x128xf32>
      tpu.vector_store %arg9[%c0_52, %c0_53], %157 {strides = array<i32>} : memref<1x128xf32, #tpu.memory_space<vmem>>, vector<1x128xf32>,
      %c0_54 = arith.constant 0 : index
      %c0_55 = arith.constant 0 : index
      %159 = vector.load %arg5[%c0_54, %c0_55] : memref<1x128xf32, #tpu.memory_space<vmem>>, vector<1x128xf32>
      %160 = arith.mulf %146, %157 : vector<1x128xf32>
      %161 = arith.subf %159, %160 : vector<1x128xf32>
      %c0_56 = arith.constant 0 : index
      %c0_57 = arith.constant 0 : index
      %162 = vector.load %arg10[%c0_56, %c0_57] : memref<1x128xf32, #tpu.memory_space<vmem>>, vector<1x128xf32>
      tpu.vector_store %arg10[%c0_56, %c0_57], %161 {strides = array<i32>} : memref<1x128xf32, #tpu.memory_space<vmem>>, vector<1x128xf32>,
    } else {
    }
    %c1_i32_9 = arith.constant 1 : i32
    %16 = arith.cmpi eq, %arg0, %c1_i32_9 : i32
    %17 = arith.extui %16 : i1 to i32
    %c0_i32_10 = arith.constant 0 : i32
    %18 = arith.cmpi ne, %17, %c0_i32_10 : i32
    scf.if %18 {
      %c0_11 = arith.constant 0 : index
      %c0_12 = arith.constant 0 : index
      %19 = vector.load %arg9[%c0_11, %c0_12] : memref<1x128xf32, #tpu.memory_space<vmem>>, vector<1x128xf32>
      %20 = vector.broadcast %19 : vector<1x128xf32> to vector<64x128xf32>
      %21 = arith.mulf %7, %20 : vector<64x128xf32>
      %c0_13 = arith.constant 0 : index
      %c0_14 = arith.constant 0 : index
      %22 = vector.load %arg10[%c0_13, %c0_14] : memref<1x128xf32, #tpu.memory_space<vmem>>, vector<1x128xf32>
      %23 = vector.broadcast %22 : vector<1x128xf32> to vector<64x128xf32>
      %24 = arith.addf %21, %23 : vector<64x128xf32>
      %cst_15 = arith.constant 0.000000e+00 : f32
      %25 = vector.broadcast %cst_15 : f32 to vector<64x128xf32>
      %26 = arith.subf %25, %24 : vector<64x128xf32>
      %27 = math.exp %26 : vector<64x128xf32>
      %cst_16 = arith.constant 1.000000e+00 : f32
      %28 = vector.broadcast %cst_16 : f32 to vector<64x128xf32>
      %29 = arith.addf %28, %27 : vector<64x128xf32>
      %30 = tpu.reciprocal %29 {approx = true} : vector<64x128xf32> -> vector<64x128xf32>
      %31 = arith.mulf %24, %30 : vector<64x128xf32>
      %c0_17 = arith.constant 0 : index
      %c0_18 = arith.constant 0 : index
      %32 = vector.load %arg6[%c0_17, %c0_18] : memref<64x128xf32, #tpu.memory_space<vmem>>, vector<64x128xf32>
      tpu.vector_store %arg6[%c0_17, %c0_18], %31 {strides = array<i32>} : memref<64x128xf32, #tpu.memory_space<vmem>>, vector<64x128xf32>,
    } else {
    }
    return
  }
  func.func @transform_0(%arg0: i32, %arg1: i32) -> (i32, i32) {
    %c0_i32 = arith.constant 0 : i32
    %c0_i32_0 = arith.constant 0 : i32
    return %arg1, %c0_i32 : i32, i32
  }
  func.func @transform_1(%arg0: i32, %arg1: i32) -> (i32, i32) {
    %c0_i32 = arith.constant 0 : i32
    %c0_i32_0 = arith.constant 0 : i32
    %c0_i32_1 = arith.constant 0 : i32
    return %c0_i32, %c0_i32_0 : i32, i32
  }
  func.func @transform_2(%arg0: i32, %arg1: i32) -> (i32, i32) {
    %c0_i32 = arith.constant 0 : i32
    %c0_i32_0 = arith.constant 0 : i32
    %c0_i32_1 = arith.constant 0 : i32
    return %c0_i32, %c0_i32_0 : i32, i32
  }
  func.func @transform_3(%arg0: i32, %arg1: i32) -> (i32, i32) {
    %c0_i32 = arith.constant 0 : i32
    %c0_i32_0 = arith.constant 0 : i32
    %c0_i32_1 = arith.constant 0 : i32
    return %c0_i32, %c0_i32_0 : i32, i32
  }
  func.func @transform_4(%arg0: i32, %arg1: i32) -> (i32, i32) {
    %0 = arith.muli %arg1, %arg0 : i32
    %c0_i32 = arith.constant 0 : i32
    %c0_i32_0 = arith.constant 0 : i32
    return %0, %c0_i32 : i32, i32
  }
}

</mosaic_0001>

<bundles_post_ra>
// kernel: tile.23
= control target key start
LH: loop header
LB: loop body
LE: loop exit
PB: predicated region body
PF: predicated region fallthrough
CT: control target
= control target key end

     0   :  { %s28_s0 = inlined_call_operand.vmem [shape: f32[8], index: 0, kind: input, shape index: {}]   ;;  %s29_s1 = inlined_call_operand.vmem [shape: f32[16,8], index: 1, kind: output, shape index: {}]  }
   0x1   :  { %v4_v0 = vld [vmem:[%s28_s0] ss:$0 sm:$0xff] }
   0x2   :  { %5 = vst [vmem:[%s29_s1] sm:$0xff] %v4_v0 }
   0x3   :  { %8 = vst [vmem:[%s29_s1 + $0x8] sm:$0xff] %v4_v0 }

// kernel: tile.24
= control target key start
LH: loop header
LB: loop body
LE: loop exit
PB: predicated region body
PF: predicated region fallthrough
CT: control target
= control target key end

     0   :  { %s131_s10 = smov 120   ;;  %s132_s11 = smov 104   ;;  %vm3_vm0 = vcmask 64512   ;;  %vm9_vm1 = vcmask 1048512   ;;  %vm15_vm2 = vcmask 982912   ;;  %vm21_vm3 = vcmask 917312   ;;  %s207_s0 = inlined_call_operand.vmem [shape: f32[16,8], index: 0, kind: input, shape index: {}]   ;;  %s208_s1 = inlined_call_operand.vmem [shape: f32[1,128], index: 1, kind: output, shape index: {}]  }
   0x1   :  { %v101_v0 = vld [vmem:[%s207_s0 + $0xf] sm:$0x1]   ;;  %v103_v1 = vld [vmem:[%s207_s0 + $0xd] sm:$0x1]   ;;  %v105_v2 = vld [vmem:[%s207_s0 + $0xb] sm:$0x1]  }
   0x2   :  { %7 = vrot.lane.b32.xlu0 %v101_v0, %s131_s10  ;;  %19 = vrot.lane.b32.xlu1 %v103_v1, %s132_s11  ;;  %s133_s14 = smov 88   ;;  %v102_v3 = vld [vmem:[%s207_s0 + $0xe] sm:$0x1]   ;;  %v104_v4 = vld [vmem:[%s207_s0 + $0xc] sm:$0x1]   ;;  %s134_s19 = smov 112  }
   0x3   :  { %31 = vrot.lane.b32.xlu2 %v105_v2, %s133_s14  ;;  %s135_s20 = smov 96   ;;  %v106_v5 = vld [vmem:[%s207_s0 + $0xa] sm:$0x1]   ;;  %s136_s23 = smov 80   ;;  %v107_v6 = vld [vmem:[%s207_s0 + $0x9] sm:$0x1]  }
   0x4   :  { %v108_v7 = vld [vmem:[%s207_s0 + $0x8] sm:$0x1]   ;;  %s137_s28 = smov 72   ;;  %s138_s29 = smov 64   ;;  %v109_v8 = vld [vmem:[%s207_s0 + $0x7] sm:$0x1]  }
   0x5   :  { %s139_s3 = smov 56   ;;  %v110_v9 = vld [vmem:[%s207_s0 + $0x6] sm:$0x1]   ;;  %v111_v10 = vld [vmem:[%s207_s0 + $0x5] sm:$0x1]   ;;  %s140_s8 = smov 48  }
   0x6   :  { %s141_s9 = smov 40   ;;  %v112_v11 = vld [vmem:[%s207_s0 + $0x4] sm:$0x1]   ;;  %s142_s12 = smov 32   ;;  %v113_v12 = vld [vmem:[%s207_s0 + $0x3] sm:$0x1]  }
   0x7   :  { %v114_v13 = vld [vmem:[%s207_s0 + $0x2] sm:$0x1]   ;;  %s143_s17 = smov 24   ;;  %s144_s18 = smov 16   ;;  %v115_v14 = vld [vmem:[%s207_s0 + $0x1] sm:$0x1]  }
   0x8   :  { %s145_s21 = smov 8   ;;  %v2_v15 = vld [vmem:[%s207_s0] sm:$0x1]   ;;  %vm27_vm4 = vcmask 851712   ;;  %vm33_vm5 = vcmask 786112   ;;  %vm39_vm6 = vcmask 720512  }
   0x9   :  { %4 = vst.msk [vmem:[#allocation0] sm:$0x1] %vm3_vm0, %v2_v15   ;;  %vm45_vm7 = vcmask 654912   ;;  %vm51_vm8 = vcmask 589312   ;;  %vm57_vm9 = vcmask 523712   ;;  %vm63_vm10 = vcmask 458112  }
   0xa   :  { %13 = vrot.lane.b32.xlu0 %v102_v3, %s134_s19  ;;  %25 = vrot.lane.b32.xlu1 %v104_v4, %s135_s20  ;;  %vm69_vm11 = vcmask 392512   ;;  %vm75_vm12 = vcmask 326912   ;;  %vm81_vm13 = vcmask 261312   ;;  %vm87_vm14 = vcmask 195712  }
   0xb   :  { %37 = vrot.lane.b32.xlu2 %v106_v5, %s136_s23  ;;  %vm93_vm15 = vcmask 130112  }
  0x12   :  { %43 = vrot.lane.b32.xlu0 %v107_v6, %s137_s28  ;;  %49 = vrot.lane.b32.xlu1 %v108_v7, %s138_s29 }
  0x13   :  { %55 = vrot.lane.b32.xlu2 %v109_v8, %s139_s3 }
  0x1a   :  { %61 = vrot.lane.b32.xlu0 %v110_v9, %s140_s8  ;;  %67 = vrot.lane.b32.xlu1 %v111_v10, %s141_s9 }
  0x1b   :  { %73 = vrot.lane.b32.xlu2 %v112_v11, %s142_s12 }
  0x22   :  { %79 = vrot.lane.b32.xlu0 %v113_v12, %s143_s17  ;;  %85 = vrot.lane.b32.xlu1 %v114_v13, %s144_s18 }
  0x23   :  { %91 = vrot.lane.b32.xlu2 %v115_v14, %s145_s21 }
  0x5d   :  { %v32_v16 = vpop.permute.xlu2 %31  }
  0x65   :  { %v38_v17 = vpop.permute.xlu2 %37  }
  0x6d   :  { %v56_v18 = vpop.permute.xlu2 %55  }
  0x74   :  { %v8_v19 = vpop.permute.xlu0 %7   ;;  %v20_v20 = vpop.permute.xlu1 %19  }
  0x75   :  { %10 = vst.msk [vmem:[#allocation0] sm:$0x1] %vm9_vm1, %v8_v19   ;;  %v74_v21 = vpop.permute.xlu2 %73  }
  0x7c   :  { %v14_v22 = vpop.permute.xlu0 %13   ;;  %v26_v23 = vpop.permute.xlu1 %25  }
  0x7d   :  { %16 = vst.msk [vmem:[#allocation0] sm:$0x1] %vm15_vm2, %v14_v22   ;;  %v92_v24 = vpop.permute.xlu2 %91  }
  0x7e   :  { %22 = vst.msk [vmem:[#allocation0] sm:$0x1] %vm21_vm3, %v20_v20  }
  0x7f   :  { %28 = vst.msk [vmem:[#allocation0] sm:$0x1] %vm27_vm4, %v26_v23  }
  0x80   :  { %34 = vst.msk [vmem:[#allocation0] sm:$0x1] %vm33_vm5, %v32_v16  }
  0x81   :  { %40 = vst.msk [vmem:[#allocation0] sm:$0x1] %vm39_vm6, %v38_v17  }
  0x84   :  { %v44_v25 = vpop.permute.xlu0 %43   ;;  %v50_v26 = vpop.permute.xlu1 %49  }
  0x85   :  { %46 = vst.msk [vmem:[#allocation0] sm:$0x1] %vm45_vm7, %v44_v25  }
  0x86   :  { %52 = vst.msk [vmem:[#allocation0] sm:$0x1] %vm51_vm8, %v50_v26  }
  0x87   :  { %58 = vst.msk [vmem:[#allocation0] sm:$0x1] %vm57_vm9, %v56_v18  }
  0x8c   :  { %v62_v27 = vpop.permute.xlu0 %61   ;;  %v68_v28 = vpop.permute.xlu1 %67  }
  0x8d   :  { %64 = vst.msk [vmem:[#allocation0] sm:$0x1] %vm63_vm10, %v62_v27  }
  0x8e   :  { %70 = vst.msk [vmem:[#allocation0] sm:$0x1] %vm69_vm11, %v68_v28  }
  0x8f   :  { %76 = vst.msk [vmem:[#allocation0] sm:$0x1] %vm75_vm12, %v74_v21  }
  0x94   :  { %v80_v29 = vpop.permute.xlu0 %79   ;;  %v86_v30 = vpop.permute.xlu1 %85  }
  0x95   :  { %82 = vst.msk [vmem:[#allocation0] sm:$0x1] %vm81_vm13, %v80_v29  }
  0x96   :  { %88 = vst.msk [vmem:[#allocation0] sm:$0x1] %vm87_vm14, %v86_v30  }
  0x97   :  { %94 = vst.msk [vmem:[#allocation0] sm:$0x1] %vm93_vm15, %v92_v24  }
  0x9e   :  { %v97_v31 = vld [vmem:[#allocation0] sm:$0x1] }
  0x9f   :  { %100 = vst [vmem:[%s208_s1] sm:$0x1] %v97_v31 }

// kernel: tile.33
= control target key start
LH: loop header
LB: loop body
LE: loop exit
PB: predicated region body
PF: predicated region fallthrough
CT: control target
= control target key end

     0   :  { %s40_s0 = inlined_call_operand.vmem [shape: f32[4], index: 0, kind: input, shape index: {}]   ;;  %s41_s1 = inlined_call_operand.vmem [shape: f32[32,4], index: 1, kind: output, shape index: {}]  }
   0x1   :  { %v4_v0 = vld [vmem:[%s40_s0] ss:$0 sm:$0xff] }
   0x2   :  { %5 = vst [vmem:[%s41_s1] sm:$0xff] %v4_v0 }
   0x3   :  { %12 = vst [vmem:[%s41_s1 + $0x8] sm:$0xff] %v4_v0 }
   0x4   :  { %13 = vst [vmem:[%s41_s1 + $0x10] sm:$0xff] %v4_v0 }
   0x5   :  { %14 = vst [vmem:[%s41_s1 + $0x18] sm:$0xff] %v4_v0 }

// kernel: tile.34
= control target key start
LH: loop header
LB: loop body
LE: loop exit
PB: predicated region body
PF: predicated region fallthrough
CT: control target
= control target key end

     0   :  { %s259_s10 = smov 124   ;;  %s260_s11 = smov 116   ;;  %vm3_vm0 = vcmask 31744   ;;  %vm9_vm1 = vcmask 1048544   ;;  %vm15_vm2 = vcmask 1015744   ;;  %vm21_vm3 = vcmask 982944   ;;  %s399_s0 = inlined_call_operand.vmem [shape: f32[32,4], index: 0, kind: input, shape index: {}]   ;;  %s400_s1 = inlined_call_operand.vmem [shape: f32[1,128], index: 1, kind: output, shape index: {}]  }
   0x1   :  { %v197_v0 = vld [vmem:[%s399_s0 + $0x1f] sm:$0x1]   ;;  %v199_v1 = vld [vmem:[%s399_s0 + $0x1d] sm:$0x1]   ;;  %v201_v2 = vld [vmem:[%s399_s0 + $0x1b] sm:$0x1]  }
   0x2   :  { %7 = vrot.lane.b32.xlu0 %v197_v0, %s259_s10  ;;  %19 = vrot.lane.b32.xlu1 %v199_v1, %s260_s11  ;;  %s261_s14 = smov 108   ;;  %v198_v3 = vld [vmem:[%s399_s0 + $0x1e] sm:$0x1]   ;;  %v200_v4 = vld [vmem:[%s399_s0 + $0x1c] sm:$0x1]   ;;  %s262_s19 = smov 120  }
   0x3   :  { %31 = vrot.lane.b32.xlu2 %v201_v2, %s261_s14  ;;  %s263_s20 = smov 112   ;;  %v202_v5 = vld [vmem:[%s399_s0 + $0x1a] sm:$0x1]   ;;  %s264_s23 = smov 104   ;;  %v203_v6 = vld [vmem:[%s399_s0 + $0x19] sm:$0x1]  }
   0x4   :  { %v204_v7 = vld [vmem:[%s399_s0 + $0x18] sm:$0x1]   ;;  %s265_s28 = smov 100   ;;  %s266_s29 = smov 96   ;;  %v205_v8 = vld [vmem:[%s399_s0 + $0x17] sm:$0x1]  }
   0x5   :  { %s267_s3 = smov 92   ;;  %v206_v9 = vld [vmem:[%s399_s0 + $0x16] sm:$0x1]   ;;  %v207_v10 = vld [vmem:[%s399_s0 + $0x15] sm:$0x1]   ;;  %s268_s8 = smov 88  }
   0x6   :  { %s269_s9 = smov 84   ;;  %v208_v11 = vld [vmem:[%s399_s0 + $0x14] sm:$0x1]   ;;  %s270_s12 = smov 80   ;;  %v209_v12 = vld [vmem:[%s399_s0 + $0x13] sm:$0x1]  }
   0x7   :  { %v210_v13 = vld [vmem:[%s399_s0 + $0x12] sm:$0x1]   ;;  %s271_s17 = smov 76   ;;  %s272_s18 = smov 72   ;;  %v211_v14 = vld [vmem:[%s399_s0 + $0x11] sm:$0x1]  }
   0x8   :  { %s273_s21 = smov 68   ;;  %v212_v15 = vld [vmem:[%s399_s0 + $0x10] sm:$0x1]   ;;  %v213_v16 = vld [vmem:[%s399_s0 + $0xf] sm:$0x1]   ;;  %s274_s26 = smov 64  }
   0x9   :  { %s275_s27 = smov 60   ;;  %v214_v17 = vld [vmem:[%s399_s0 + $0xe] sm:$0x1]   ;;  %s276_s30 = smov 56   ;;  %v215_v18 = vld [vmem:[%s399_s0 + $0xd] sm:$0x1]  }
   0xa   :  { %13 = vrot.lane.b32.xlu0 %v198_v3, %s262_s19  ;;  %25 = vrot.lane.b32.xlu1 %v200_v4, %s263_s20  ;;  %v216_v19 = vld [vmem:[%s399_s0 + $0xc] sm:$0x1]   ;;  %s277_s6 = smov 52   ;;  %s278_s7 = smov 48   ;;  %v217_v20 = vld [vmem:[%s399_s0 + $0xb] sm:$0x1]  }
   0xb   :  { %37 = vrot.lane.b32.xlu2 %v202_v5, %s264_s23  ;;  %s279_s10 = smov 44   ;;  %v218_v21 = vld [vmem:[%s399_s0 + $0xa] sm:$0x1]   ;;  %v219_v22 = vld [vmem:[%s399_s0 + $0x9] sm:$0x1]   ;;  %s280_s15 = smov 40  }
   0xc   :  { %s281_s16 = smov 36   ;;  %v220_v23 = vld [vmem:[%s399_s0 + $0x8] sm:$0x1]   ;;  %s282_s19 = smov 32   ;;  %v221_v24 = vld [vmem:[%s399_s0 + $0x7] sm:$0x1]  }
   0xd   :  { %v222_v25 = vld [vmem:[%s399_s0 + $0x6] sm:$0x1]   ;;  %s283_s24 = smov 28   ;;  %s284_s25 = smov 24   ;;  %v223_v26 = vld [vmem:[%s399_s0 + $0x5] sm:$0x1]  }
   0xe   :  { %v224_v27 = vld [vmem:[%s399_s0 + $0x4] sm:$0x1]   ;;  %v225_v28 = vld [vmem:[%s399_s0 + $0x3] sm:$0x1]   ;;  %s286_s4 = smov 16   ;;  %s287_s5 = smov 12  }
   0xf   :  { %v226_v29 = vld [vmem:[%s399_s0 + $0x2] sm:$0x1]   ;;  %v227_v30 = vld [vmem:[%s399_s0 + $0x1] sm:$0x1]   ;;  %s289_s11 = smov 4   ;;  %vm27_vm4 = vcmask 950144  }
  0x10   :  { %v2_v31 = vld [vmem:[%s399_s0] sm:$0x1]   ;;  %vm33_vm5 = vcmask 917344   ;;  %vm39_vm6 = vcmask 884544   ;;  %vm45_vm7 = vcmask 851744   ;;  %vm51_vm8 = vcmask 818944  }
  0x11   :  { %4 = vst.msk [vmem:[#allocation0] sm:$0x1] %vm3_vm0, %v2_v31   ;;  %vm57_vm9 = vcmask 786144   ;;  %vm63_vm10 = vcmask 753344   ;;  %vm69_vm11 = vcmask 720544   ;;  %vm75_vm12 = vcmask 687744  }
  0x12   :  { %43 = vrot.lane.b32.xlu0 %v203_v6, %s265_s28  ;;  %49 = vrot.lane.b32.xlu1 %v204_v7, %s266_s29  ;;  %s285_s28 = smov 20   ;;  %vm81_vm13 = vcmask 654944   ;;  %vm87_vm14 = vcmask 622144   ;;  %vm93_vm15 = vcmask 589344   ;;  %vm99_vm0 = vcmask 556544  }
  0x13   :  { %55 = vrot.lane.b32.xlu2 %v205_v8, %s267_s3 }
  0x1a   :  { %61 = vrot.lane.b32.xlu0 %v206_v9, %s268_s8  ;;  %67 = vrot.lane.b32.xlu1 %v207_v10, %s269_s9  ;;  %s288_s8 = smov 8  }
  0x1b   :  { %73 = vrot.lane.b32.xlu2 %v208_v11, %s270_s12 }
  0x22   :  { %79 = vrot.lane.b32.xlu0 %v209_v12, %s271_s17  ;;  %85 = vrot.lane.b32.xlu1 %v210_v13, %s272_s18 }
  0x23   :  { %91 = vrot.lane.b32.xlu2 %v211_v14, %s273_s21 }
  0x2a   :  { %97 = vrot.lane.b32.xlu0 %v212_v15, %s274_s26  ;;  %103 = vrot.lane.b32.xlu1 %v213_v16, %s275_s27 }
  0x2b   :  { %109 = vrot.lane.b32.xlu2 %v214_v17, %s276_s30 }
  0x32   :  { %115 = vrot.lane.b32.xlu0 %v215_v18, %s277_s6  ;;  %121 = vrot.lane.b32.xlu1 %v216_v19, %s278_s7 }
  0x33   :  { %127 = vrot.lane.b32.xlu2 %v217_v20, %s279_s10 }
  0x3a   :  { %133 = vrot.lane.b32.xlu0 %v218_v21, %s280_s15  ;;  %139 = vrot.lane.b32.xlu1 %v219_v22, %s281_s16 }
  0x3b   :  { %145 = vrot.lane.b32.xlu2 %v220_v23, %s282_s19 }
  0x42   :  { %151 = vrot.lane.b32.xlu0 %v221_v24, %s283_s24  ;;  %157 = vrot.lane.b32.xlu1 %v222_v25, %s284_s25 }
  0x43   :  { %163 = vrot.lane.b32.xlu2 %v223_v26, %s285_s28 }
  0x4a   :  { %169 = vrot.lane.b32.xlu0 %v224_v27, %s286_s4  ;;  %175 = vrot.lane.b32.xlu1 %v225_v28, %s287_s5 }
  0x4b   :  { %181 = vrot.lane.b32.xlu2 %v226_v29, %s288_s8 }
  0x52   :  { %187 = vrot.lane.b32.xlu0 %v227_v30, %s289_s11 }
  0x5d   :  { %v32_v32 = vpop.permute.xlu2 %31  }
  0x65   :  { %v38_v33 = vpop.permute.xlu2 %37  }
  0x6d   :  { %v56_v34 = vpop.permute.xlu2 %55  }
  0x74   :  { %v8_v35 = vpop.permute.xlu0 %7   ;;  %v20_v36 = vpop.permute.xlu1 %19  }
  0x75   :  { %10 = vst.msk [vmem:[#allocation0] sm:$0x1] %vm9_vm1, %v8_v35   ;;  %v74_v37 = vpop.permute.xlu2 %73   ;;  %vm105_vm1 = vcmask 523744  }
  0x7c   :  { %v14_v38 = vpop.permute.xlu0 %13   ;;  %v26_v39 = vpop.permute.xlu1 %25  }
  0x7d   :  { %16 = vst.msk [vmem:[#allocation0] sm:$0x1] %vm15_vm2, %v14_v38   ;;  %v92_v40 = vpop.permute.xlu2 %91   ;;  %vm111_vm2 = vcmask 490944  }
  0x7e   :  { %22 = vst.msk [vmem:[#allocation0] sm:$0x1] %vm21_vm3, %v20_v36   ;;  %vm117_vm3 = vcmask 458144  }
  0x7f   :  { %28 = vst.msk [vmem:[#allocation0] sm:$0x1] %vm27_vm4, %v26_v39   ;;  %vm123_vm4 = vcmask 425344  }
  0x80   :  { %34 = vst.msk [vmem:[#allocation0] sm:$0x1] %vm33_vm5, %v32_v32   ;;  %vm129_vm5 = vcmask 392544  }
  0x81   :  { %40 = vst.msk [vmem:[#allocation0] sm:$0x1] %vm39_vm6, %v38_v33   ;;  %vm135_vm6 = vcmask 359744  }
  0x84   :  { %v44_v41 = vpop.permute.xlu0 %43   ;;  %v50_v42 = vpop.permute.xlu1 %49  }
  0x85   :  { %46 = vst.msk [vmem:[#allocation0] sm:$0x1] %vm45_vm7, %v44_v41   ;;  %v110_v43 = vpop.permute.xlu2 %109   ;;  %vm141_vm7 = vcmask 326944  }
  0x86   :  { %52 = vst.msk [vmem:[#allocation0] sm:$0x1] %vm51_vm8, %v50_v42   ;;  %vm147_vm8 = vcmask 294144  }
  0x87   :  { %58 = vst.msk [vmem:[#allocation0] sm:$0x1] %vm57_vm9, %v56_v34   ;;  %vm153_vm9 = vcmask 261344  }
  0x8c   :  { %v62_v44 = vpop.permute.xlu0 %61   ;;  %v68_v45 = vpop.permute.xlu1 %67  }
  0x8d   :  { %64 = vst.msk [vmem:[#allocation0] sm:$0x1] %vm63_vm10, %v62_v44   ;;  %v128_v46 = vpop.permute.xlu2 %127   ;;  %vm159_vm10 = vcmask 228544  }
  0x8e   :  { %70 = vst.msk [vmem:[#allocation0] sm:$0x1] %vm69_vm11, %v68_v45   ;;  %vm165_vm11 = vcmask 195744  }
  0x8f   :  { %76 = vst.msk [vmem:[#allocation0] sm:$0x1] %vm75_vm12, %v74_v37   ;;  %vm171_vm12 = vcmask 162944  }
  0x94   :  { %v80_v47 = vpop.permute.xlu0 %79   ;;  %v86_v48 = vpop.permute.xlu1 %85  }
  0x95   :  { %82 = vst.msk [vmem:[#allocation0] sm:$0x1] %vm81_vm13, %v80_v47   ;;  %v146_v49 = vpop.permute.xlu2 %145   ;;  %vm177_vm13 = vcmask 130144  }
  0x96   :  { %88 = vst.msk [vmem:[#allocation0] sm:$0x1] %vm87_vm14, %v86_v48   ;;  %vm183_vm14 = vcmask 97344  }
  0x97   :  { %94 = vst.msk [vmem:[#allocation0] sm:$0x1] %vm93_vm15, %v92_v40   ;;  %vm189_vm15 = vcmask 64544  }
  0x9c   :  { %v98_v50 = vpop.permute.xlu0 %97   ;;  %v104_v51 = vpop.permute.xlu1 %103  }
  0x9d   :  { %100 = vst.msk [vmem:[#allocation0] sm:$0x1] %vm99_vm0, %v98_v50   ;;  %v164_v52 = vpop.permute.xlu2 %163  }
  0x9e   :  { %106 = vst.msk [vmem:[#allocation0] sm:$0x1] %vm105_vm1, %v104_v51  }
  0x9f   :  { %112 = vst.msk [vmem:[#allocation0] sm:$0x1] %vm111_vm2, %v110_v43  }
  0xa4   :  { %v116_v53 = vpop.permute.xlu0 %115   ;;  %v122_v54 = vpop.permute.xlu1 %121  }
  0xa5   :  { %118 = vst.msk [vmem:[#allocation0] sm:$0x1] %vm117_vm3, %v116_v53   ;;  %v182_v55 = vpop.permute.xlu2 %181  }
  0xa6   :  { %124 = vst.msk [vmem:[#allocation0] sm:$0x1] %vm123_vm4, %v122_v54  }
  0xa7   :  { %130 = vst.msk [vmem:[#allocation0] sm:$0x1] %vm129_vm5, %v128_v46  }
  0xac   :  { %v134_v56 = vpop.permute.xlu0 %133   ;;  %v140_v57 = vpop.permute.xlu1 %139  }
  0xad   :  { %136 = vst.msk [vmem:[#allocation0] sm:$0x1] %vm135_vm6, %v134_v56  }
  0xae   :  { %142 = vst.msk [vmem:[#allocation0] sm:$0x1] %vm141_vm7, %v140_v57  }
  0xaf   :  { %148 = vst.msk [vmem:[#allocation0] sm:$0x1] %vm147_vm8, %v146_v49  }
  0xb4   :  { %v152_v58 = vpop.permute.xlu0 %151   ;;  %v158_v59 = vpop.permute.xlu1 %157  }
  0xb5   :  { %154 = vst.msk [vmem:[#allocation0] sm:$0x1] %vm153_vm9, %v152_v58  }
  0xb6   :  { %160 = vst.msk [vmem:[#allocation0] sm:$0x1] %vm159_vm10, %v158_v59  }
  0xb7   :  { %166 = vst.msk [vmem:[#allocation0] sm:$0x1] %vm165_vm11, %v164_v52  }
  0xbc   :  { %v170_v60 = vpop.permute.xlu0 %169   ;;  %v176_v61 = vpop.permute.xlu1 %175  }
  0xbd   :  { %172 = vst.msk [vmem:[#allocation0] sm:$0x1] %vm171_vm12, %v170_v60  }
  0xbe   :  { %178 = vst.msk [vmem:[#allocation0] sm:$0x1] %vm177_vm13, %v176_v61  }
  0xbf   :  { %184 = vst.msk [vmem:[#allocation0] sm:$0x1] %vm183_vm14, %v182_v55  }
  0xc4   :  { %v188_v62 = vpop.permute.xlu0 %187  }
  0xc5   :  { %190 = vst.msk [vmem:[#allocation0] sm:$0x1] %vm189_vm15, %v188_v62  }
  0xcc   :  { %v193_v63 = vld [vmem:[#allocation0] sm:$0x1] }
  0xcd   :  { %196 = vst [vmem:[%s400_s1] sm:$0x1] %v193_v63 }

// kernel: decoder_block.2
= control target key start
LH: loop header
LB: loop body
LE: loop exit
PB: predicated region body
PF: predicated region fallthrough
CT: control target
= control target key end

     0   :  { %s772_s15 = smov 0   ;;  %s774_s16 = smov 0   ;;  %s889_s0 = inlined_call_operand.vmem [shape: bf16[32,96], index: 0, kind: input, shape index: {}]   ;;  %s890_s1 = inlined_call_operand.vmem [shape: bf16[96,128], index: 1, kind: input, shape index: {}]   ;;  %s891_s2 = inlined_call_operand.vmem [shape: f32[1,128], index: 2, kind: input, shape index: {}]   ;;  %s892_s3 = inlined_call_operand.vmem [shape: f32[1,128], index: 3, kind: input, shape index: {}]   ;;  %s893_s4 = inlined_call_operand.vmem [shape: f32[32,128], index: 4, kind: output, shape index: {}]  }
   0x1   :  { %s776_s17 = smov 0  }
   0x2 LB: > { %s26_s18 = sadd.s32 1, %s725_s16  ;;  %p588_p0 = scmp.ge.s32.totalorder %s729_s17, 1  ;;  %s729_s17 = sphi %s776_s17, %s14_s17   ;;  %s725_s16 = sphi %s774_s16, %s895_s16   ;;  %s721_s15 = sphi %s772_s15, %s894_s15  }
   0x3   : > { %p28_p1 = scmp.ge.s32.totalorder %s26_s18, 2  ;;  %p177_p2 = scmp.lt.s32.totalorder %s729_s17, 3 }
   0x5   : > { %s897_s18 = smov (%p28_p1, %s26_s18), 0  ;;  %p178_p3 = pnand %p588_p0, %p177_p2 }
   0x6   : > { %p219_p4 = scmp.eq.s32.totalorder (!%p178_p3), %s721_s15, 0 }
   0x7   : > { %181 = sbr.rel (%p178_p3) target bundleno = 465 (0x1d1), region = 36 }
   0xc   : > { %224 = sbr.rel (!%p219_p4) target bundleno = 17 (0x11), region = 40  ;;  %v731_v0 = vmov (%p219_p4), 0.0  }
   0xd   : > { %225 = vst [vmem:[#allocation2] sm:$0x1] (%p219_p4), %v731_v0 }
   0xe   : > { %226 = vst [vmem:[#allocation3] sm:$0x1] (%p219_p4), %v731_v0 }
  0x11 PF: > { %v639_v1 = vld [vmem:[%s890_s1 + $0x28] sm:$0xff]  ;;  %v638_v2 = vld [vmem:[%s890_s1 + $0x20] sm:$0xff]  ;;  %v637_v3 = vld [vmem:[%s890_s1 + $0x18] sm:$0xff]  ;;  %vm289_vm0 = vcmask 785408   ;;  %p624_p5 = scmp.ne.s32.totalorder %s721_s15, 0 }
  0x12   : > { %298 = vmatpush.bf16.msra.mxu0 %v639_v1  ;;  %641 = vmatpush.bf16.msra.mxu1 %v639_v1  ;;  %v636_v4 = vld [vmem:[%s890_s1 + $0x10] sm:$0xff]  ;;  %v635_v5 = vld [vmem:[%s890_s1 + $0x8] sm:$0xff]  ;;  %v634_v6 = vld [vmem:[%s890_s1] sm:$0xff] }
  0x13   : > { %v632_v7 = vld [vmem:[%s889_s0] sm:$0xff]  ;;  %v633_v8 = vld [vmem:[%s889_s0 + $0x8] sm:$0xff] }
  0x16   : > { %299 = vmatpush.bf16.msra.mxu0 %v638_v2  ;;  %642 = vmatpush.bf16.msra.mxu1 %v638_v2 }
  0x1a   : > { %300 = vmatpush.bf16.msra.mxu0 %v637_v3  ;;  %643 = vmatpush.bf16.msra.mxu1 %v637_v3 }
  0x1e   : > { %301 = vmatpush.bf16.msra.mxu0 %v636_v4  ;;  %644 = vmatpush.bf16.msra.mxu1 %v636_v4 }
  0x22   : > { %302 = vmatpush.bf16.msra.mxu0 %v635_v5  ;;  %645 = vmatpush.bf16.msra.mxu1 %v635_v5 }
  0x26   : > { %303 = vmatpush.bf16.msra.mxu0 %v634_v6  ;;  %646 = vmatpush.bf16.msra.mxu1 %v634_v6 }
  0x29   : > { %622 = vmatmul.msk.bf16.vlgmr.msra.gmra.mxu0 %vm289_vm0, %v632_v7  ;;  %623 = vmatmul.msk.bf16.vlgmr.msra.gmra.mxu1 %vm289_vm0, %v633_v8 }
  0xa6   : > { %v817_v9 = vpop.f32.mrf.mxu0  ;;  %v819_v10 = vpop.f32.mrf.mxu1 }
  0xaa   : > { %317 = sbr.rel (%p624_p5) target bundleno = 198 (0xc6), region = 44 }
  0xae   : > { %v821_v11 = vpop.f32.mrf.mxu0  ;;  %v823_v12 = vpop.f32.mrf.mxu1 }
  0xaf   : > { %v319_v13 = vadd.f32 %v821_v11, %v817_v9  ;;  %v331_v14 = vmul.f32 %v817_v9, %v817_v9  ;;  %v332_v15 = vmul.f32 %v821_v11, %v821_v11  ;;  %v333_v16 = vmul.f32 %v819_v10, %v819_v10  ;;  %v318_v32 = vld [vmem:[#allocation2] sm:$0x1]  ;;  %v330_v35 = vld [vmem:[#allocation3] sm:$0x1] }
  0xb0   : > { %v334_v18 = vmul.f32 %v823_v12, %v823_v12 }
  0xb1   : > { %v320_v17 = vadd.f32 %v319_v13, %v819_v10  ;;  %v335_v19 = vadd.f32 %v332_v15, %v331_v14 }
  0xb3   : > { %v321_v20 = vadd.f32 %v320_v17, %v823_v12  ;;  %v336_v21 = vadd.f32 %v335_v19, %v333_v16 }
  0xb5   : > { %v322_v22 = vrot.slane %v321_v20, 4  ;;  %v337_v23 = vadd.f32 %v336_v21, %v334_v18 }
  0xb7   : > { %v323_v24 = vadd.f32 %v322_v22, %v321_v20  ;;  %v338_v25 = vrot.slane %v337_v23, 4 }
  0xb9   : > { %v324_v26 = vrot.slane %v323_v24, 2  ;;  %v339_v27 = vadd.f32 %v338_v25, %v337_v23 }
  0xbb   : > { %v325_v28 = vadd.f32 %v324_v26, %v323_v24  ;;  %v340_v29 = vrot.slane %v339_v27, 2 }
  0xbd   : > { %v326_v30 = vrot.slane %v325_v28, 1  ;;  %v341_v31 = vadd.f32 %v340_v29, %v339_v27 }
  0xbf   : > { %v327_v33 = vadd.f32 %v326_v30, %v325_v28  ;;  %v342_v34 = vrot.slane %v341_v31, 1 }
  0xc1   : > { %v328_v36 = vadd.f32 %v327_v33, %v318_v32  ;;  %v343_v37 = vadd.f32 %v342_v34, %v341_v31 }
  0xc3   : > { %329 = vst [vmem:[#allocation2] sm:$0x1] %v328_v36  ;;  %v344_v38 = vadd.f32 %v343_v37, %v330_v35 }
  0xc5   : > { %345 = vst [vmem:[#allocation3] sm:$0x1] %v344_v38 }
  0xc6 PF: > { %p346_p6 = scmp.eq.s32.totalorder %s721_s15, 1 }
  0xc7   : > { %s732_s9 = smov (%p346_p6), 16   ;;  %s733_s10 = smov (%p346_p6), 8  }
  0xc8   : > { %350 = sbr.rel (!%p346_p6) target bundleno = 427 (0x1ab), region = 48  ;;  %s734_s11 = smov (%p346_p6), 24  }
  0xc9   : > { %s735_s12 = smov (%p346_p6), 32   ;;  %s736_s13 = smov (%p346_p6), 40  }
  0xca   : > { %v839_v39 = vld [vmem:[#allocation2] sm:$0x1] (%p346_p6)  ;;  %s737_s14 = smov (%p346_p6), 48   ;;  %s738_s19 = smov (%p346_p6), 56  }
  0xcb   : > { %359 = vrot.lane.b32.xlu1 (%p346_p6), %v839_v39, %s732_s9  ;;  %353 = vrot.lane.b32.xlu0 (%p346_p6), %v839_v39, %s733_s10  ;;  %s739_s20 = smov (%p346_p6), 64   ;;  %s740_s21 = smov (%p346_p6), 72  }
  0xcc   : > { %365 = vrot.lane.b32.xlu2 (%p346_p6), %v839_v39, %s734_s11  ;;  %v352_v40 = vld [vmem:[#allocation3] sm:$0x1] (%p346_p6)  ;;  %s741_s22 = smov (%p346_p6), 80   ;;  %s742_s23 = smov (%p346_p6), 88  }
  0xcd   : > { %s743_s24 = smov 96   ;;  %s744_s25 = smov 104  }
  0xce   : > { %s745_s26 = smov 112   ;;  %s746_s27 = smov 120  }
  0xd3   : > { %362 = vrot.lane.b32.xlu1 %v352_v40, %s732_s9  ;;  %356 = vrot.lane.b32.xlu0 %v352_v40, %s733_s10 }
  0xd4   : > { %368 = vrot.lane.b32.xlu2 %v352_v40, %s734_s11 }
  0xdb   : > { %374 = vrot.lane.b32.xlu1 %v352_v40, %s735_s12  ;;  %371 = vrot.lane.b32.xlu0 %v839_v39, %s735_s12 }
  0xdc   : > { %377 = vrot.lane.b32.xlu2 %v839_v39, %s736_s13 }
  0xe3   : > { %383 = vrot.lane.b32.xlu1 %v839_v39, %s737_s14  ;;  %380 = vrot.lane.b32.xlu0 %v352_v40, %s736_s13 }
  0xe4   : > { %386 = vrot.lane.b32.xlu2 %v352_v40, %s737_s14 }
  0xeb   : > { %392 = vrot.lane.b32.xlu1 %v352_v40, %s738_s19  ;;  %389 = vrot.lane.b32.xlu0 %v839_v39, %s738_s19 }
  0xec   : > { %395 = vrot.lane.b32.xlu2 %v839_v39, %s739_s20 }
  0xf3   : > { %401 = vrot.lane.b32.xlu1 %v839_v39, %s740_s21  ;;  %398 = vrot.lane.b32.xlu0 %v352_v40, %s739_s20 }
  0xf4   : > { %404 = vrot.lane.b32.xlu2 %v352_v40, %s740_s21 }
  0xfb   : > { %410 = vrot.lane.b32.xlu1 %v352_v40, %s741_s22  ;;  %407 = vrot.lane.b32.xlu0 %v839_v39, %s741_s22 }
  0xfc   : > { %413 = vrot.lane.b32.xlu2 %v839_v39, %s742_s23 }
 0x103   : > { %419 = vrot.lane.b32.xlu1 %v839_v39, %s743_s24  ;;  %416 = vrot.lane.b32.xlu0 %v352_v40, %s742_s23 }
 0x104   : > { %422 = vrot.lane.b32.xlu2 %v352_v40, %s743_s24 }
 0x10b   : > { %428 = vrot.lane.b32.xlu1 %v352_v40, %s744_s25  ;;  %425 = vrot.lane.b32.xlu0 %v839_v39, %s744_s25 }
 0x10c   : > { %431 = vrot.lane.b32.xlu2 %v839_v39, %s745_s26 }
 0x113   : > { %437 = vrot.lane.b32.xlu1 %v839_v39, %s746_s27  ;;  %434 = vrot.lane.b32.xlu0 %v352_v40, %s745_s26 }
 0x114   : > { %440 = vrot.lane.b32.xlu2 %v352_v40, %s746_s27 }
 0x126   : > { %v366_v41 = vpop.permute.xlu2 %365 }
 0x12e   : > { %v369_v42 = vpop.permute.xlu2 %368 }
 0x136   : > { %v378_v45 = vpop.permute.xlu2 %377 }
 0x13d   : > { %v360_v43 = vpop.permute.xlu1 %359  ;;  %v354_v44 = vpop.permute.xlu0 %353 }
 0x13e   : > { %v387_v48 = vpop.permute.xlu2 %386  ;;  %v355_v57 = vadd.f32 %v354_v44, %v839_v39 }
 0x140   : > { %v361_v58 = vadd.f32 %v360_v43, %v355_v57 }
 0x142   : > { %v367_v62 = vadd.f32 %v366_v41, %v361_v58 }
 0x145   : > { %v363_v46 = vpop.permute.xlu1 %362  ;;  %v357_v47 = vpop.permute.xlu0 %356 }
 0x146   : > { %v396_v51 = vpop.permute.xlu2 %395  ;;  %v358_v59 = vadd.f32 %v357_v47, %v352_v40 }
 0x148   : > { %v364_v63 = vadd.f32 %v363_v46, %v358_v59 }
 0x14a   : > { %v370_v2 = vadd.f32 %v369_v42, %v364_v63 }
 0x14d   : > { %v375_v49 = vpop.permute.xlu1 %374  ;;  %v372_v50 = vpop.permute.xlu0 %371 }
 0x14e   : > { %v405_v54 = vpop.permute.xlu2 %404  ;;  %v373_v1 = vadd.f32 %v372_v50, %v367_v62  ;;  %v376_v3 = vadd.f32 %v375_v49, %v370_v2 }
 0x150   : > { %v379_v4 = vadd.f32 %v378_v45, %v373_v1 }
 0x155   : > { %v384_v52 = vpop.permute.xlu1 %383  ;;  %v381_v53 = vpop.permute.xlu0 %380 }
 0x156   : > { %v414_v0 = vpop.permute.xlu2 %413  ;;  %v385_v7 = vadd.f32 %v384_v52, %v379_v4  ;;  %v382_v8 = vadd.f32 %v381_v53, %v376_v3  ;;  %v448_v52 = vld [vmem:[%s891_s2] sm:$0x1] }
 0x158   : > { %v388_v15 = vadd.f32 %v387_v48, %v382_v8 }
 0x15d   : > { %v393_v55 = vpop.permute.xlu1 %392  ;;  %v390_v56 = vpop.permute.xlu0 %389 }
 0x15e   : > { %v391_v13 = vadd.f32 %v390_v56, %v385_v7  ;;  %v423_v14 = vpop.permute.xlu2 %422  ;;  %v394_v16 = vadd.f32 %v393_v55, %v388_v15  ;;  %v462_v56 = vld [vmem:[%s892_s3] sm:$0x1] }
 0x160   : > { %v397_v17 = vadd.f32 %v396_v51, %v391_v13 }
 0x165   : > { %v402_v60 = vpop.permute.xlu1 %401  ;;  %v399_v61 = vpop.permute.xlu0 %398 }
 0x166   : > { %v403_v20 = vadd.f32 %v402_v60, %v397_v17  ;;  %v400_v21 = vadd.f32 %v399_v61, %v394_v16  ;;  %v432_v24 = vpop.permute.xlu2 %431 }
 0x168   : > { %v406_v23 = vadd.f32 %v405_v54, %v400_v21 }
 0x16d   : > { %v411_v5 = vpop.permute.xlu1 %410  ;;  %v408_v6 = vpop.permute.xlu0 %407 }
 0x16e   : > { %v409_v22 = vadd.f32 %v408_v6, %v403_v20  ;;  %v412_v25 = vadd.f32 %v411_v5, %v406_v23  ;;  %v441_v35 = vpop.permute.xlu2 %440 }
 0x170   : > { %v415_v26 = vadd.f32 %v414_v0, %v409_v22 }
 0x175   : > { %v420_v18 = vpop.permute.xlu1 %419  ;;  %v417_v19 = vpop.permute.xlu0 %416 }
 0x176   : > { %v421_v29 = vadd.f32 %v420_v18, %v415_v26  ;;  %v418_v30 = vadd.f32 %v417_v19, %v412_v25 }
 0x178   : > { %v424_v32 = vadd.f32 %v423_v14, %v418_v30 }
 0x17d   : > { %v429_v27 = vpop.permute.xlu1 %428  ;;  %v426_v28 = vpop.permute.xlu0 %425 }
 0x17e   : > { %v427_v31 = vadd.f32 %v426_v28, %v421_v29  ;;  %v430_v33 = vadd.f32 %v429_v27, %v424_v32 }
 0x180   : > { %v433_v34 = vadd.f32 %v432_v24, %v427_v31 }
 0x185   : > { %v438_v36 = vpop.permute.xlu1 %437  ;;  %v435_v37 = vpop.permute.xlu0 %434 }
 0x186   : > { %v439_v38 = vadd.f32 %v438_v36, %v433_v34  ;;  %v436_v39 = vadd.f32 %v435_v37, %v430_v33 }
 0x188   : > { %v443_v40 = vmul.f32 0.001953125, %v439_v38  ;;  %v442_v41 = vadd.f32 %v441_v35, %v436_v39 }
 0x18a   : > { %v445_v42 = vmul.f32 %v443_v40, %v443_v40  ;;  %v444_v43 = vmul.f32 0.001953125, %v442_v41 }
 0x18c   : > { %v446_v44 = vsub.f32 %v444_v43, %v445_v42 }
 0x18e   : > { %v447_v45 = vmax.f32 %v446_v44, 0.0 }
 0x190   : > { %v449_v46 = vadd.f32 1e-05, %v447_v45 }
 0x192   : > { %687 = vrsqrt.f32 %v449_v46  ;;  %vm456_vm2 = vweird.f32 %v449_v46 }
 0x198   : > { %v688_v47 = vpop.eup %687 }
 0x199   : > { %v451_v48 = vmul.f32 %v688_v47, %v449_v46  ;;  %vm457_vm1 = vweird.f32 %v688_v47 }
 0x19a   : > { %vm458_vm3 = vmor %vm456_vm2, %vm457_vm1 }
 0x19b   : > { %v452_v49 = vmul.f32 %v688_v47, %v451_v48 }
 0x19d   : > { %v453_v50 = vmul.f32 0.5, %v452_v49 }
 0x19f   : > { %v454_v51 = vsub.f32 1.5, %v453_v50 }
 0x1a1   : > { %v455_v53 = vmul.f32 %v688_v47, %v454_v51 }
 0x1a3   : > { %v459_v54 = vsel %vm458_vm3, %v688_v47, %v455_v53 }
 0x1a4   : > { %v460_v55 = vmul.f32 %v459_v54, %v448_v52 }
 0x1a6   : > { %461 = vst [vmem:[#allocation4] sm:$0x1] %v460_v55  ;;  %v463_v57 = vmul.f32 %v460_v55, %v443_v40 }
 0x1a8   : > { %v464_v58 = vsub.f32 %v462_v56, %v463_v57 }
 0x1aa   : > { %465 = vst [vmem:[#allocation5] sm:$0x1] %v464_v58 }
 0x1ab PF: > { %p626_p7 = scmp.ne.s32.totalorder %s721_s15, 1 }
 0x1ad   : > { %468 = sbr.rel (%p626_p7) target bundleno = 465 (0x1d1), region = 52 }
 0x1b2   : > { %v689_v59 = vld [vmem:[#allocation4] ss:$0 sm:$0xff]  ;;  %v690_v60 = vld [vmem:[#allocation5] ss:$0 sm:$0xff] }
 0x1b3   : > { %v473_v61 = vmul.f32 %v689_v59, %v817_v9  ;;  %v474_v62 = vmul.f32 %v689_v59, %v821_v11  ;;  %v475_v63 = vmul.f32 %v689_v59, %v819_v10  ;;  %v476_v0 = vmul.f32 %v689_v59, %v823_v12 }
 0x1b5   : > { %v481_v1 = vadd.f32 %v690_v60, %v473_v61  ;;  %v482_v2 = vadd.f32 %v690_v60, %v474_v62  ;;  %v483_v3 = vadd.f32 %v690_v60, %v475_v63  ;;  %v484_v4 = vadd.f32 %v690_v60, %v476_v0 }
 0x1b7   : > { %v485_v5 = vsub.f32 0.0, %v481_v1  ;;  %v486_v6 = vsub.f32 0.0, %v482_v2  ;;  %v487_v7 = vsub.f32 0.0, %v483_v3  ;;  %v488_v8 = vsub.f32 0.0, %v484_v4 }
 0x1b9   : > { %v489_v13 = vmul.f32 1.442695, %v485_v5  ;;  %v491_v14 = vmul.f32 1.442695, %v486_v6  ;;  %v493_v15 = vmul.f32 1.442695, %v487_v7 }
 0x1ba   : > { %v495_v16 = vmul.f32 1.442695, %v488_v8 }
 0x1bb   : > { %691 = vpow2.f32 %v489_v13 }
 0x1bc   : > { %693 = vpow2.f32 %v491_v14 }
 0x1bd   : > { %695 = vpow2.f32 %v493_v15 }
 0x1be   : > { %697 = vpow2.f32 %v495_v16 }
 0x1c1   : > { %v692_v9 = vpop.eup %691 }
 0x1c2   : > { %v694_v10 = vpop.eup %693  ;;  %v497_v11 = vadd.f32 1.0, %v692_v9 }
 0x1c3   : > { %v696_v12 = vpop.eup %695  ;;  %v498_v17 = vadd.f32 1.0, %v694_v10 }
 0x1c4   : > { %v698_v18 = vpop.eup %697  ;;  %699 = vrcp.f32 %v497_v11  ;;  %v499_v19 = vadd.f32 1.0, %v696_v12 }
 0x1c5   : > { %701 = vrcp.f32 %v498_v17  ;;  %v500_v20 = vadd.f32 1.0, %v698_v18 }
 0x1c6   : > { %703 = vrcp.f32 %v499_v19 }
 0x1c7   : > { %705 = vrcp.f32 %v500_v20 }
 0x1ca   : > { %v700_v21 = vpop.eup %699 }
 0x1cb   : > { %v702_v22 = vpop.eup %701  ;;  %v505_v23 = vmul.f32 %v700_v21, %v481_v1 }
 0x1cc   : > { %v704_v24 = vpop.eup %703  ;;  %v506_v25 = vmul.f32 %v702_v22, %v482_v2 }
 0x1cd   : > { %v706_v26 = vpop.eup %705  ;;  %509 = vst [vmem:[%s893_s4] sm:$0xff] %v505_v23  ;;  %v507_v27 = vmul.f32 %v704_v24, %v483_v3 }
 0x1ce   : > { %510 = vst [vmem:[%s893_s4 + $0x8] sm:$0xff] %v506_v25  ;;  %v508_v28 = vmul.f32 %v706_v26, %v484_v4 }
 0x1cf   : > { %511 = vst [vmem:[%s893_s4 + $0x10] sm:$0xff] %v507_v27 }
 0x1d0   : > { %512 = vst [vmem:[%s893_s4 + $0x18] sm:$0xff] %v508_v28 }
 0x1d1 PF: > { %s14_s17 = sadd.s32 1, %s729_s17   ;;  %s894_s15 = smov %s725_s16 }
 0x1d2   : > { %p11_p8 = scmp.ge.s32.totalorder %s14_s17, 4   ;;  %s895_s16 = smov %s897_s18 }
 0x1d4   :  { %13 = sbr.rel (!%p11_p8) target bundleno = 2 (0x2), region = 82 }

// kernel: decoder_block.3
= control target key start
LH: loop header
LB: loop body
LE: loop exit
PB: predicated region body
PF: predicated region fallthrough
CT: control target
= control target key end

     0   :  { %s1200_s15 = smov 0   ;;  %s1202_s16 = smov 0   ;;  %s1495_s0 = inlined_call_operand.vmem [shape: bf16[64,256], index: 0, kind: input, shape index: {}]   ;;  %s1496_s1 = inlined_call_operand.vmem [shape: bf16[256,128], index: 1, kind: input, shape index: {}]   ;;  %s1497_s2 = inlined_call_operand.vmem [shape: f32[1,128], index: 2, kind: input, shape index: {}]   ;;  %s1498_s3 = inlined_call_operand.vmem [shape: f32[1,128], index: 3, kind: input, shape index: {}]   ;;  %s1499_s4 = inlined_call_operand.vmem [shape: f32[64,128], index: 4, kind: output, shape index: {}]  }
   0x1   :  { %s1204_s17 = smov 0  }
   0x2 LB: > { %s26_s18 = sadd.s32 1, %s1137_s16  ;;  %p880_p0 = scmp.ge.s32.totalorder %s1141_s17, 1  ;;  %s1141_s17 = sphi %s1204_s17, %s14_s17   ;;  %s1137_s16 = sphi %s1202_s16, %s1501_s16   ;;  %s1133_s15 = sphi %s1200_s15, %s1500_s15  }
   0x3   : > { %p28_p1 = scmp.ge.s32.totalorder %s26_s18, 2  ;;  %p178_p2 = scmp.lt.s32.totalorder %s1141_s17, 3 }
   0x5   : > { %s1503_s18 = smov (%p28_p1, %s26_s18), 0  ;;  %p179_p3 = pnand %p880_p0, %p178_p2 }
   0x6   : > { %p221_p4 = scmp.eq.s32.totalorder (!%p179_p3), %s1133_s15, 0 }
   0x7   : > { %182 = sbr.rel (%p179_p3) target bundleno = 597 (0x255), region = 36 }
   0xc   : > { %226 = sbr.rel (!%p221_p4) target bundleno = 17 (0x11), region = 40  ;;  %v1143_v0 = vmov (%p221_p4), 0.0  }
   0xd   : > { %227 = vst [vmem:[#allocation2] sm:$0x1] (%p221_p4), %v1143_v0 }
   0xe   : > { %228 = vst [vmem:[#allocation3] sm:$0x1] (%p221_p4), %v1143_v0 }
  0x11 PF: > { %v1001_v1 = vld [vmem:[%s1496_s1 + $0x38] sm:$0xff]  ;;  %v1000_v3 = vld [vmem:[%s1496_s1 + $0x30] sm:$0xff]  ;;  %v999_v5 = vld [vmem:[%s1496_s1 + $0x28] sm:$0xff]  ;;  %p978_p5 = scmp.ne.s32.totalorder %s1133_s15, 0 }
  0x12   : > { %v1009_v2 = vld [vmem:[%s1496_s1 + $0x78] sm:$0xff]  ;;  %405 = vmatpush.bf16.msra.mxu0 %v1001_v1  ;;  %1011 = vmatpush.bf16.msra.mxu2 %v1001_v1  ;;  %v1008_v4 = vld [vmem:[%s1496_s1 + $0x70] sm:$0xff]  ;;  %v1007_v6 = vld [vmem:[%s1496_s1 + $0x68] sm:$0xff] }
  0x13   : > { %434 = vmatpush.bf16.msra.mxu1 %v1009_v2  ;;  %1019 = vmatpush.bf16.msra.mxu3 %v1009_v2  ;;  %v998_v7 = vld [vmem:[%s1496_s1 + $0x20] sm:$0xff]  ;;  %v997_v9 = vld [vmem:[%s1496_s1 + $0x18] sm:$0xff]  ;;  %v996_v11 = vld [vmem:[%s1496_s1 + $0x10] sm:$0xff] }
  0x14   : > { %v1006_v8 = vld [vmem:[%s1496_s1 + $0x60] sm:$0xff]  ;;  %v1005_v10 = vld [vmem:[%s1496_s1 + $0x58] sm:$0xff]  ;;  %v1004_v12 = vld [vmem:[%s1496_s1 + $0x50] sm:$0xff] }
  0x15   : > { %v995_v13 = vld [vmem:[%s1496_s1 + $0x8] sm:$0xff]  ;;  %v994_v15 = vld [vmem:[%s1496_s1] sm:$0xff]  ;;  %v892_v29 = vld [vmem:[%s1495_s0 + $0x10] sm:$0xf] }
  0x16   : > { %406 = vmatpush.bf16.msra.mxu0 %v1000_v3  ;;  %1012 = vmatpush.bf16.msra.mxu2 %v1000_v3  ;;  %v1003_v14 = vld [vmem:[%s1496_s1 + $0x48] sm:$0xff]  ;;  %v1002_v16 = vld [vmem:[%s1496_s1 + $0x40] sm:$0xff]  ;;  %v989_v30 = vld [vmem:[%s1495_s0 + $0x14] sm:$0xf0] }
  0x17   : > { %435 = vmatpush.bf16.msra.mxu1 %v1008_v4  ;;  %1020 = vmatpush.bf16.msra.mxu3 %v1008_v4  ;;  %v884_v17 = vld [vmem:[%s1495_s0] sm:$0xf]  ;;  %v987_v18 = vld [vmem:[%s1495_s0 + $0x4] sm:$0xf0]  ;;  %v986_v21 = vld [vmem:[%s1495_s0 + $0x4] sm:$0xf]  ;;  %v893_v37 = vor.u32 %v989_v30, %v892_v29 }
  0x18   : > { %v900_v19 = vld [vmem:[%s1495_s0 + $0x20] sm:$0xf]  ;;  %v991_v20 = vld [vmem:[%s1495_s0 + $0x24] sm:$0xf0]  ;;  %v886_v22 = vld [vmem:[%s1495_s0 + $0x8] sm:$0xf0]  ;;  %v885_v25 = vor.u32 %v987_v18, %v884_v17 }
  0x19   : > { %v990_v23 = vld [vmem:[%s1495_s0 + $0x24] sm:$0xf]  ;;  %v902_v24 = vld [vmem:[%s1495_s0 + $0x28] sm:$0xf0]  ;;  %v901_v26 = vor.u32 %v991_v20, %v900_v19  ;;  %v889_v27 = vor.u32 %v986_v21, %v886_v22  ;;  %v908_v31 = vld [vmem:[%s1495_s0 + $0x30] sm:$0xf] }
  0x1a   : > { %407 = vmatpush.bf16.msra.mxu0 %v999_v5  ;;  %1013 = vmatpush.bf16.msra.mxu2 %v999_v5  ;;  %v905_v28 = vor.u32 %v990_v23, %v902_v24  ;;  %v993_v32 = vld [vmem:[%s1495_s0 + $0x34] sm:$0xf0]  ;;  %v988_v33 = vld [vmem:[%s1495_s0 + $0x14] sm:$0xf]  ;;  %v894_v34 = vld [vmem:[%s1495_s0 + $0x18] sm:$0xf0] }
  0x1b   : > { %436 = vmatpush.bf16.msra.mxu1 %v1007_v6  ;;  %1021 = vmatpush.bf16.msra.mxu3 %v1007_v6  ;;  %v992_v35 = vld [vmem:[%s1495_s0 + $0x34] sm:$0xf]  ;;  %v910_v36 = vld [vmem:[%s1495_s0 + $0x38] sm:$0xf0]  ;;  %v909_v38 = vor.u32 %v993_v32, %v908_v31  ;;  %v897_v39 = vor.u32 %v988_v33, %v894_v34 }
  0x1c   : > { %v913_v40 = vor.u32 %v992_v35, %v910_v36 }
  0x1e   : > { %408 = vmatpush.bf16.msra.mxu0 %v998_v7  ;;  %1014 = vmatpush.bf16.msra.mxu2 %v998_v7 }
  0x1f   : > { %437 = vmatpush.bf16.msra.mxu1 %v1006_v8  ;;  %1022 = vmatpush.bf16.msra.mxu3 %v1006_v8 }
  0x22   : > { %409 = vmatpush.bf16.msra.mxu0 %v997_v9  ;;  %1015 = vmatpush.bf16.msra.mxu2 %v997_v9 }
  0x23   : > { %438 = vmatpush.bf16.msra.mxu1 %v1005_v10  ;;  %1023 = vmatpush.bf16.msra.mxu3 %v1005_v10 }
  0x26   : > { %410 = vmatpush.bf16.msra.mxu0 %v996_v11  ;;  %1016 = vmatpush.bf16.msra.mxu2 %v996_v11 }
  0x27   : > { %439 = vmatpush.bf16.msra.mxu1 %v1004_v12  ;;  %1024 = vmatpush.bf16.msra.mxu3 %v1004_v12 }
  0x2a   : > { %411 = vmatpush.bf16.msra.mxu0 %v995_v13  ;;  %1017 = vmatpush.bf16.msra.mxu2 %v995_v13 }
  0x2b   : > { %440 = vmatpush.bf16.msra.mxu1 %v1003_v14  ;;  %1025 = vmatpush.bf16.msra.mxu3 %v1003_v14 }
  0x2e   : > { %412 = vmatpush.bf16.msra.mxu0 %v994_v15  ;;  %1018 = vmatpush.bf16.msra.mxu2 %v994_v15 }
  0x2f   : > { %441 = vmatpush.bf16.msra.mxu1 %v1002_v16  ;;  %1026 = vmatpush.bf16.msra.mxu3 %v1002_v16 }
  0x31   : > { %413 = vmatmul.bf16.vlgmr.msra.gmra.mxu0 %v885_v25  ;;  %423 = vmatmul.bf16.vlgmr.msra.gmra.mxu2 %v901_v26 }
  0x32   : > { %442 = vmatmul.bf16.vlgmr.msra.gmra.mxu1 %v889_v27  ;;  %452 = vmatmul.bf16.vlgmr.msra.gmra.mxu3 %v905_v28 }
  0x41   : > { %418 = vmatmul.bf16.gmra.mxu0 %v893_v37  ;;  %428 = vmatmul.bf16.gmra.mxu2 %v909_v38 }
  0x42   : > { %447 = vmatmul.bf16.gmra.mxu1 %v897_v39  ;;  %457 = vmatmul.bf16.gmra.mxu3 %v913_v40 }
  0xae   : > { %v414_v41 = vpop.f32.mrf.mxu0 }
  0xaf   : > { %v443_v42 = vpop.f32.mrf.mxu1 }
  0xb0   : > { %v1317_v43 = vadd.f32 %v443_v42, %v414_v41 }
  0xb4   : > { %v424_v44 = vpop.f32.mrf.mxu2 }
  0xb5   : > { %v453_v45 = vpop.f32.mrf.mxu3 }
  0xb6   : > { %v1319_v46 = vadd.f32 %v453_v45, %v424_v44  ;;  %v416_v47 = vpop.f32.mrf.mxu0 }
  0xb7   : > { %v445_v48 = vpop.f32.mrf.mxu1 }
  0xb8   : > { %v1321_v49 = vadd.f32 %v445_v48, %v416_v47 }
  0xbc   : > { %v426_v50 = vpop.f32.mrf.mxu2 }
  0xbd   : > { %v455_v51 = vpop.f32.mrf.mxu3 }
  0xbe   : > { %v1323_v52 = vadd.f32 %v455_v51, %v426_v50  ;;  %v419_v53 = vpop.f32.mrf.mxu0 }
  0xbf   : > { %v448_v54 = vpop.f32.mrf.mxu1 }
  0xc0   : > { %v1325_v55 = vadd.f32 %v448_v54, %v419_v53 }
  0xc4   : > { %v429_v56 = vpop.f32.mrf.mxu2 }
  0xc5   : > { %v458_v57 = vpop.f32.mrf.mxu3 }
  0xc6   : > { %v1327_v58 = vadd.f32 %v458_v57, %v429_v56  ;;  %v421_v59 = vpop.f32.mrf.mxu0 }
  0xc7   : > { %v450_v60 = vpop.f32.mrf.mxu1 }
  0xc8   : > { %v1329_v61 = vadd.f32 %v450_v60, %v421_v59 }
  0xca   : > { %465 = sbr.rel (%p978_p5) target bundleno = 238 (0xee), region = 44 }
  0xcc   : > { %v431_v62 = vpop.f32.mrf.mxu2 }
  0xcd   : > { %v460_v63 = vpop.f32.mrf.mxu3 }
  0xce   : > { %v1331_v0 = vadd.f32 %v460_v63, %v431_v62 }
  0xcf   : > { %v467_v1 = vadd.f32 %v1321_v49, %v1317_v43  ;;  %v483_v2 = vmul.f32 %v1317_v43, %v1317_v43  ;;  %v484_v3 = vmul.f32 %v1321_v49, %v1321_v49  ;;  %v485_v4 = vmul.f32 %v1325_v55, %v1325_v55  ;;  %v466_v32 = vld [vmem:[#allocation2] sm:$0x1]  ;;  %v482_v35 = vld [vmem:[#allocation3] sm:$0x1] }
  0xd0   : > { %v486_v6 = vmul.f32 %v1329_v61, %v1329_v61  ;;  %v487_v9 = vmul.f32 %v1319_v46, %v1319_v46  ;;  %v488_v12 = vmul.f32 %v1323_v52, %v1323_v52  ;;  %v489_v15 = vmul.f32 %v1327_v58, %v1327_v58 }
  0xd1   : > { %v468_v5 = vadd.f32 %v467_v1, %v1325_v55  ;;  %v491_v7 = vadd.f32 %v484_v3, %v483_v2  ;;  %v490_v18 = vmul.f32 %v1331_v0, %v1331_v0 }
  0xd3   : > { %v469_v8 = vadd.f32 %v468_v5, %v1329_v61  ;;  %v492_v10 = vadd.f32 %v491_v7, %v485_v4 }
  0xd5   : > { %v470_v11 = vadd.f32 %v469_v8, %v1319_v46  ;;  %v493_v13 = vadd.f32 %v492_v10, %v486_v6 }
  0xd7   : > { %v471_v14 = vadd.f32 %v470_v11, %v1323_v52  ;;  %v494_v16 = vadd.f32 %v493_v13, %v487_v9 }
  0xd9   : > { %v472_v17 = vadd.f32 %v471_v14, %v1327_v58  ;;  %v495_v19 = vadd.f32 %v494_v16, %v488_v12 }
  0xdb   : > { %v473_v20 = vadd.f32 %v472_v17, %v1331_v0  ;;  %v496_v21 = vadd.f32 %v495_v19, %v489_v15 }
  0xdd   : > { %v474_v22 = vrot.slane %v473_v20, 4  ;;  %v497_v23 = vadd.f32 %v496_v21, %v490_v18 }
  0xdf   : > { %v475_v24 = vadd.f32 %v474_v22, %v473_v20  ;;  %v498_v25 = vrot.slane %v497_v23, 4 }
  0xe1   : > { %v476_v26 = vrot.slane %v475_v24, 2  ;;  %v499_v27 = vadd.f32 %v498_v25, %v497_v23 }
  0xe3   : > { %v477_v28 = vadd.f32 %v476_v26, %v475_v24  ;;  %v500_v29 = vrot.slane %v499_v27, 2 }
  0xe5   : > { %v478_v30 = vrot.slane %v477_v28, 1  ;;  %v501_v31 = vadd.f32 %v500_v29, %v499_v27 }
  0xe7   : > { %v479_v33 = vadd.f32 %v478_v30, %v477_v28  ;;  %v502_v34 = vrot.slane %v501_v31, 1 }
  0xe9   : > { %v480_v36 = vadd.f32 %v479_v33, %v466_v32  ;;  %v503_v37 = vadd.f32 %v502_v34, %v501_v31 }
  0xeb   : > { %481 = vst [vmem:[#allocation2] sm:$0x1] %v480_v36  ;;  %v504_v38 = vadd.f32 %v503_v37, %v482_v35 }
  0xed   : > { %505 = vst [vmem:[#allocation3] sm:$0x1] %v504_v38 }
  0xee PF: > { %p506_p6 = scmp.eq.s32.totalorder %s1133_s15, 1 }
  0xef   : > { %s1144_s13 = smov (%p506_p6), 8   ;;  %s1145_s14 = smov (%p506_p6), 4  }
  0xf0   : > { %510 = sbr.rel (!%p506_p6) target bundleno = 555 (0x22b), region = 48  ;;  %s1146_s19 = smov (%p506_p6), 12  }
  0xf1   : > { %s1147_s20 = smov (%p506_p6), 16   ;;  %s1148_s21 = smov (%p506_p6), 20  }
  0xf2   : > { %v1359_v39 = vld [vmem:[#allocation2] sm:$0x1] (%p506_p6)  ;;  %s1149_s22 = smov (%p506_p6), 24   ;;  %s1150_s23 = smov (%p506_p6), 28  }
  0xf3   : > { %519 = vrot.lane.b32.xlu1 (%p506_p6), %v1359_v39, %s1144_s13  ;;  %513 = vrot.lane.b32.xlu0 (%p506_p6), %v1359_v39, %s1145_s14  ;;  %s1151_s24 = smov (%p506_p6), 32   ;;  %s1152_s25 = smov (%p506_p6), 36  }
  0xf4   : > { %525 = vrot.lane.b32.xlu2 (%p506_p6), %v1359_v39, %s1146_s19  ;;  %v1364_v40 = vld [vmem:[#allocation3] sm:$0x1] (%p506_p6)  ;;  %s1153_s26 = smov (%p506_p6), 40   ;;  %s1154_s27 = smov (%p506_p6), 44  }
  0xf5   : > { %s1155_s28 = smov 48   ;;  %s1156_s29 = smov 52  }
  0xf6   : > { %s1157_s30 = smov 56   ;;  %s1158_s5 = smov 60  }
  0xf7   : > { %s1159_s6 = smov 64   ;;  %s1160_s7 = smov 68  }
  0xf8   : > { %s1161_s8 = smov 72   ;;  %s1162_s9 = smov 76  }
  0xf9   : > { %s1163_s10 = smov 80   ;;  %s1164_s11 = smov 84  }
  0xfa   : > { %s1165_s12 = smov 88  }
  0xfb   : > { %522 = vrot.lane.b32.xlu1 %v1364_v40, %s1144_s13  ;;  %516 = vrot.lane.b32.xlu0 %v1364_v40, %s1145_s14  ;;  %s1166_s13 = smov 92   ;;  %s1167_s14 = smov 96  }
  0xfc   : > { %528 = vrot.lane.b32.xlu2 %v1364_v40, %s1146_s19  ;;  %s1168_s19 = smov 100  }
 0x103   : > { %534 = vrot.lane.b32.xlu1 %v1364_v40, %s1147_s20  ;;  %531 = vrot.lane.b32.xlu0 %v1359_v39, %s1147_s20  ;;  %s1169_s20 = smov 104  }
 0x104   : > { %537 = vrot.lane.b32.xlu2 %v1359_v39, %s1148_s21 }
 0x10b   : > { %543 = vrot.lane.b32.xlu1 %v1359_v39, %s1149_s22  ;;  %540 = vrot.lane.b32.xlu0 %v1364_v40, %s1148_s21  ;;  %s1170_s21 = smov 108  }
 0x10c   : > { %546 = vrot.lane.b32.xlu2 %v1364_v40, %s1149_s22  ;;  %s1171_s22 = smov 112  }
 0x113   : > { %552 = vrot.lane.b32.xlu1 %v1364_v40, %s1150_s23  ;;  %549 = vrot.lane.b32.xlu0 %v1359_v39, %s1150_s23  ;;  %s1172_s23 = smov 116  }
 0x114   : > { %555 = vrot.lane.b32.xlu2 %v1359_v39, %s1151_s24 }
 0x11b   : > { %561 = vrot.lane.b32.xlu1 %v1359_v39, %s1152_s25  ;;  %558 = vrot.lane.b32.xlu0 %v1364_v40, %s1151_s24  ;;  %s1173_s24 = smov 120  }
 0x11c   : > { %564 = vrot.lane.b32.xlu2 %v1364_v40, %s1152_s25  ;;  %s1174_s25 = smov 124  }
 0x123   : > { %570 = vrot.lane.b32.xlu1 %v1364_v40, %s1153_s26  ;;  %567 = vrot.lane.b32.xlu0 %v1359_v39, %s1153_s26 }
 0x124   : > { %573 = vrot.lane.b32.xlu2 %v1359_v39, %s1154_s27 }
 0x12b   : > { %579 = vrot.lane.b32.xlu1 %v1359_v39, %s1155_s28  ;;  %576 = vrot.lane.b32.xlu0 %v1364_v40, %s1154_s27 }
 0x12c   : > { %582 = vrot.lane.b32.xlu2 %v1364_v40, %s1155_s28 }
 0x133   : > { %588 = vrot.lane.b32.xlu1 %v1364_v40, %s1156_s29  ;;  %585 = vrot.lane.b32.xlu0 %v1359_v39, %s1156_s29 }
 0x134   : > { %591 = vrot.lane.b32.xlu2 %v1359_v39, %s1157_s30 }
 0x13b   : > { %597 = vrot.lane.b32.xlu1 %v1359_v39, %s1158_s5  ;;  %594 = vrot.lane.b32.xlu0 %v1364_v40, %s1157_s30 }
 0x13c   : > { %600 = vrot.lane.b32.xlu2 %v1364_v40, %s1158_s5 }
 0x143   : > { %606 = vrot.lane.b32.xlu1 %v1364_v40, %s1159_s6  ;;  %603 = vrot.lane.b32.xlu0 %v1359_v39, %s1159_s6 }
 0x144   : > { %609 = vrot.lane.b32.xlu2 %v1359_v39, %s1160_s7 }
 0x14b   : > { %615 = vrot.lane.b32.xlu1 %v1359_v39, %s1161_s8  ;;  %612 = vrot.lane.b32.xlu0 %v1364_v40, %s1160_s7 }
 0x14c   : > { %618 = vrot.lane.b32.xlu2 %v1364_v40, %s1161_s8 }
 0x14e   : > { %v526_v41 = vpop.permute.xlu2 %525 }
 0x153   : > { %624 = vrot.lane.b32.xlu1 %v1364_v40, %s1162_s9  ;;  %621 = vrot.lane.b32.xlu0 %v1359_v39, %s1162_s9 }
 0x154   : > { %627 = vrot.lane.b32.xlu2 %v1359_v39, %s1163_s10 }
 0x156   : > { %v529_v42 = vpop.permute.xlu2 %528 }
 0x15b   : > { %633 = vrot.lane.b32.xlu1 %v1359_v39, %s1164_s11  ;;  %630 = vrot.lane.b32.xlu0 %v1364_v40, %s1163_s10 }
 0x15c   : > { %636 = vrot.lane.b32.xlu2 %v1364_v40, %s1164_s11 }
 0x15e   : > { %v538_v44 = vpop.permute.xlu2 %537 }
 0x163   : > { %642 = vrot.lane.b32.xlu1 %v1364_v40, %s1165_s12  ;;  %639 = vrot.lane.b32.xlu0 %v1359_v39, %s1165_s12 }
 0x164   : > { %645 = vrot.lane.b32.xlu2 %v1359_v39, %s1166_s13 }
 0x165   : > { %v520_v45 = vpop.permute.xlu1 %519  ;;  %v514_v47 = vpop.permute.xlu0 %513 }
 0x166   : > { %v515_v48 = vadd.f32 %v514_v47, %v1359_v39  ;;  %v547_v50 = vpop.permute.xlu2 %546 }
 0x168   : > { %v521_v51 = vadd.f32 %v520_v45, %v515_v48 }
 0x16a   : > { %v527_v53 = vadd.f32 %v526_v41, %v521_v51 }
 0x16b   : > { %651 = vrot.lane.b32.xlu1 %v1359_v39, %s1167_s14  ;;  %648 = vrot.lane.b32.xlu0 %v1364_v40, %s1166_s13 }
 0x16c   : > { %654 = vrot.lane.b32.xlu2 %v1364_v40, %s1167_s14 }
 0x16d   : > { %v523_v54 = vpop.permute.xlu1 %522  ;;  %v517_v56 = vpop.permute.xlu0 %516 }
 0x16e   : > { %v518_v57 = vadd.f32 %v517_v56, %v1364_v40  ;;  %v556_v59 = vpop.permute.xlu2 %555 }
 0x170   : > { %v524_v60 = vadd.f32 %v523_v54, %v518_v57 }
 0x172   : > { %v530_v62 = vadd.f32 %v529_v42, %v524_v60 }
 0x173   : > { %660 = vrot.lane.b32.xlu1 %v1364_v40, %s1168_s19  ;;  %657 = vrot.lane.b32.xlu0 %v1359_v39, %s1168_s19 }
 0x174   : > { %663 = vrot.lane.b32.xlu2 %v1359_v39, %s1169_s20 }
 0x175   : > { %v535_v63 = vpop.permute.xlu1 %534  ;;  %v532_v1 = vpop.permute.xlu0 %531 }
 0x176   : > { %v536_v2 = vadd.f32 %v535_v63, %v530_v62  ;;  %v533_v3 = vadd.f32 %v532_v1, %v527_v53  ;;  %v565_v4 = vpop.permute.xlu2 %564 }
 0x178   : > { %v539_v5 = vadd.f32 %v538_v44, %v533_v3 }
 0x17b   : > { %669 = vrot.lane.b32.xlu1 %v1359_v39, %s1170_s21  ;;  %666 = vrot.lane.b32.xlu0 %v1364_v40, %s1169_s20 }
 0x17c   : > { %672 = vrot.lane.b32.xlu2 %v1364_v40, %s1170_s21 }
 0x17d   : > { %v544_v6 = vpop.permute.xlu1 %543  ;;  %v541_v7 = vpop.permute.xlu0 %540 }
 0x17e   : > { %v545_v8 = vadd.f32 %v544_v6, %v539_v5  ;;  %v542_v9 = vadd.f32 %v541_v7, %v536_v2  ;;  %v574_v10 = vpop.permute.xlu2 %573 }
 0x180   : > { %v548_v11 = vadd.f32 %v547_v50, %v542_v9 }
 0x183   : > { %678 = vrot.lane.b32.xlu1 %v1364_v40, %s1171_s22  ;;  %675 = vrot.lane.b32.xlu0 %v1359_v39, %s1171_s22 }
 0x184   : > { %681 = vrot.lane.b32.xlu2 %v1359_v39, %s1172_s23 }
 0x185   : > { %v553_v12 = vpop.permute.xlu1 %552  ;;  %v550_v13 = vpop.permute.xlu0 %549 }
 0x186   : > { %v554_v14 = vadd.f32 %v553_v12, %v548_v11  ;;  %v551_v15 = vadd.f32 %v550_v13, %v545_v8  ;;  %v583_v17 = vpop.permute.xlu2 %582 }
 0x188   : > { %v557_v16 = vadd.f32 %v556_v59, %v551_v15 }
 0x18b   : > { %687 = vrot.lane.b32.xlu1 %v1359_v39, %s1173_s24  ;;  %684 = vrot.lane.b32.xlu0 %v1364_v40, %s1172_s23 }
 0x18c   : > { %690 = vrot.lane.b32.xlu2 %v1364_v40, %s1173_s24 }
 0x18d   : > { %v562_v18 = vpop.permute.xlu1 %561  ;;  %v559_v19 = vpop.permute.xlu0 %558 }
 0x18e   : > { %v563_v20 = vadd.f32 %v562_v18, %v557_v16  ;;  %v560_v21 = vadd.f32 %v559_v19, %v554_v14  ;;  %v592_v23 = vpop.permute.xlu2 %591 }
 0x190   : > { %v566_v22 = vadd.f32 %v565_v4, %v560_v21 }
 0x193   : > { %696 = vrot.lane.b32.xlu1 %v1364_v40, %s1174_s25  ;;  %693 = vrot.lane.b32.xlu0 %v1359_v39, %s1174_s25 }
 0x195   : > { %v571_v24 = vpop.permute.xlu1 %570  ;;  %v568_v25 = vpop.permute.xlu0 %567 }
 0x196   : > { %v572_v26 = vadd.f32 %v571_v24, %v566_v22  ;;  %v569_v27 = vadd.f32 %v568_v25, %v563_v20  ;;  %v601_v29 = vpop.permute.xlu2 %600 }
 0x198   : > { %v575_v28 = vadd.f32 %v574_v10, %v569_v27 }
 0x19d   : > { %v580_v30 = vpop.permute.xlu1 %579  ;;  %v577_v31 = vpop.permute.xlu0 %576 }
 0x19e   : > { %v581_v32 = vadd.f32 %v580_v30, %v575_v28  ;;  %v578_v33 = vadd.f32 %v577_v31, %v572_v26  ;;  %v610_v36 = vpop.permute.xlu2 %609 }
 0x1a0   : > { %v584_v56 = vadd.f32 %v583_v17, %v578_v33 }
 0x1a5   : > { %v589_v34 = vpop.permute.xlu1 %588  ;;  %v586_v35 = vpop.permute.xlu0 %585 }
 0x1a6   : > { %v619_v41 = vpop.permute.xlu2 %618  ;;  %v590_v60 = vadd.f32 %v589_v34, %v584_v56  ;;  %v587_v62 = vadd.f32 %v586_v35, %v581_v32 }
 0x1a8   : > { %v593_v2 = vadd.f32 %v592_v23, %v587_v62 }
 0x1ad   : > { %v598_v37 = vpop.permute.xlu1 %597  ;;  %v595_v38 = vpop.permute.xlu0 %594 }
 0x1ae   : > { %v628_v44 = vpop.permute.xlu2 %627  ;;  %v596_v63 = vadd.f32 %v595_v38, %v590_v60  ;;  %v599_v3 = vadd.f32 %v598_v37, %v593_v2 }
 0x1b0   : > { %v602_v4 = vadd.f32 %v601_v29, %v596_v63 }
 0x1b5   : > { %v607_v42 = vpop.permute.xlu1 %606  ;;  %v604_v40 = vpop.permute.xlu0 %603 }
 0x1b6   : > { %v637_v47 = vpop.permute.xlu2 %636  ;;  %v608_v7 = vadd.f32 %v607_v42, %v602_v4  ;;  %v605_v8 = vadd.f32 %v604_v40, %v599_v3 }
 0x1b8   : > { %v611_v10 = vadd.f32 %v610_v36, %v605_v8  ;;  %v704_v8 = vld [vmem:[%s1497_s2] sm:$0x1] }
 0x1bd   : > { %v616_v39 = vpop.permute.xlu1 %615  ;;  %v613_v45 = vpop.permute.xlu0 %612 }
 0x1be   : > { %v646_v54 = vpop.permute.xlu2 %645  ;;  %v614_v9 = vadd.f32 %v613_v45, %v608_v7  ;;  %v617_v12 = vadd.f32 %v616_v39, %v611_v10 }
 0x1c0   : > { %v620_v13 = vadd.f32 %v619_v41, %v614_v9 }
 0x1c5   : > { %v625_v48 = vpop.permute.xlu1 %624  ;;  %v622_v50 = vpop.permute.xlu0 %621 }
 0x1c6   : > { %v655_v1 = vpop.permute.xlu2 %654  ;;  %v626_v16 = vadd.f32 %v625_v48, %v620_v13  ;;  %v623_v17 = vadd.f32 %v622_v50, %v617_v12  ;;  %v718_v12 = vld [vmem:[%s1498_s3] sm:$0x1] }
 0x1c8   : > { %v629_v19 = vadd.f32 %v628_v44, %v623_v17 }
 0x1cd   : > { %v634_v51 = vpop.permute.xlu1 %633  ;;  %v631_v53 = vpop.permute.xlu0 %630 }
 0x1ce   : > { %v664_v11 = vpop.permute.xlu2 %663  ;;  %v632_v18 = vadd.f32 %v631_v53, %v626_v16  ;;  %v635_v20 = vadd.f32 %v634_v51, %v629_v19 }
 0x1d0   : > { %v638_v21 = vadd.f32 %v637_v47, %v632_v18 }
 0x1d5   : > { %v643_v57 = vpop.permute.xlu1 %642  ;;  %v640_v59 = vpop.permute.xlu0 %639 }
 0x1d6   : > { %v673_v22 = vpop.permute.xlu2 %672  ;;  %v644_v25 = vadd.f32 %v643_v57, %v638_v21  ;;  %v641_v26 = vadd.f32 %v640_v59, %v635_v20 }
 0x1d8   : > { %v647_v28 = vadd.f32 %v646_v54, %v641_v26 }
 0x1dd   : > { %v652_v5 = vpop.permute.xlu1 %651  ;;  %v649_v6 = vpop.permute.xlu0 %648 }
 0x1de   : > { %v650_v27 = vadd.f32 %v649_v6, %v644_v25  ;;  %v653_v29 = vadd.f32 %v652_v5, %v647_v28  ;;  %v682_v35 = vpop.permute.xlu2 %681 }
 0x1e0   : > { %v656_v30 = vadd.f32 %v655_v1, %v650_v27 }
 0x1e5   : > { %v661_v14 = vpop.permute.xlu1 %660  ;;  %v658_v15 = vpop.permute.xlu0 %657 }
 0x1e6   : > { %v662_v33 = vadd.f32 %v661_v14, %v656_v30  ;;  %v659_v34 = vadd.f32 %v658_v15, %v653_v29  ;;  %v691_v47 = vpop.permute.xlu2 %690 }
 0x1e8   : > { %v665_v37 = vadd.f32 %v664_v11, %v659_v34 }
 0x1ed   : > { %v670_v23 = vpop.permute.xlu1 %669  ;;  %v667_v24 = vpop.permute.xlu0 %666 }
 0x1ee   : > { %v668_v36 = vadd.f32 %v667_v24, %v662_v33  ;;  %v671_v38 = vadd.f32 %v670_v23, %v665_v37 }
 0x1f0   : > { %v674_v41 = vadd.f32 %v673_v22, %v668_v36 }
 0x1f5   : > { %v679_v31 = vpop.permute.xlu1 %678  ;;  %v676_v32 = vpop.permute.xlu0 %675 }
 0x1f6   : > { %v680_v44 = vadd.f32 %v679_v31, %v674_v41  ;;  %v677_v39 = vadd.f32 %v676_v32, %v671_v38 }
 0x1f8   : > { %v683_v48 = vadd.f32 %v682_v35, %v677_v39 }
 0x1fd   : > { %v688_v42 = vpop.permute.xlu1 %687  ;;  %v685_v40 = vpop.permute.xlu0 %684 }
 0x1fe   : > { %v686_v45 = vadd.f32 %v685_v40, %v680_v44  ;;  %v689_v50 = vadd.f32 %v688_v42, %v683_v48 }
 0x200   : > { %v692_v51 = vadd.f32 %v691_v47, %v686_v45 }
 0x205   : > { %v697_v53 = vpop.permute.xlu1 %696  ;;  %v694_v54 = vpop.permute.xlu0 %693 }
 0x206   : > { %v698_v56 = vadd.f32 %v697_v53, %v692_v51  ;;  %v695_v57 = vadd.f32 %v694_v54, %v689_v50 }
 0x208   : > { %v699_v59 = vmul.f32 0.00048828125, %v695_v57  ;;  %v700_v60 = vmul.f32 0.00048828125, %v698_v56 }
 0x20a   : > { %v701_v62 = vmul.f32 %v699_v59, %v699_v59 }
 0x20c   : > { %v702_v63 = vsub.f32 %v700_v60, %v701_v62 }
 0x20e   : > { %v703_v1 = vmax.f32 %v702_v63, 0.0 }
 0x210   : > { %v705_v2 = vadd.f32 1e-05, %v703_v1 }
 0x212   : > { %1083 = vrsqrt.f32 %v705_v2  ;;  %vm712_vm1 = vweird.f32 %v705_v2 }
 0x218   : > { %v1084_v3 = vpop.eup %1083 }
 0x219   : > { %v707_v4 = vmul.f32 %v1084_v3, %v705_v2  ;;  %vm713_vm0 = vweird.f32 %v1084_v3 }
 0x21a   : > { %vm714_vm2 = vmor %vm712_vm1, %vm713_vm0 }
 0x21b   : > { %v708_v5 = vmul.f32 %v1084_v3, %v707_v4 }
 0x21d   : > { %v709_v6 = vmul.f32 0.5, %v708_v5 }
 0x21f   : > { %v710_v7 = vsub.f32 1.5, %v709_v6 }
 0x221   : > { %v711_v9 = vmul.f32 %v1084_v3, %v710_v7 }
 0x223   : > { %v715_v10 = vsel %vm714_vm2, %v1084_v3, %v711_v9 }
 0x224   : > { %v716_v11 = vmul.f32 %v715_v10, %v704_v8 }
 0x226   : > { %717 = vst [vmem:[#allocation4] sm:$0x1] %v716_v11  ;;  %v719_v13 = vmul.f32 %v716_v11, %v699_v59 }
 0x228   : > { %v720_v14 = vsub.f32 %v718_v12, %v719_v13 }
 0x22a   : > { %721 = vst [vmem:[#allocation5] sm:$0x1] %v720_v14 }
 0x22b PF: > { %p980_p7 = scmp.ne.s32.totalorder %s1133_s15, 1 }
 0x22d   : > { %724 = sbr.rel (%p980_p7) target bundleno = 597 (0x255), region = 52 }
 0x232   : > { %v1085_v15 = vld [vmem:[#allocation4] ss:$0 sm:$0xff]  ;;  %v1086_v16 = vld [vmem:[#allocation5] ss:$0 sm:$0xff] }
 0x233   : > { %v729_v17 = vmul.f32 %v1085_v15, %v1317_v43  ;;  %v730_v18 = vmul.f32 %v1085_v15, %v1321_v49  ;;  %v731_v19 = vmul.f32 %v1085_v15, %v1325_v55  ;;  %v732_v20 = vmul.f32 %v1085_v15, %v1329_v61 }
 0x234   : > { %v733_v21 = vmul.f32 %v1085_v15, %v1319_v46  ;;  %v734_v22 = vmul.f32 %v1085_v15, %v1323_v52  ;;  %v735_v23 = vmul.f32 %v1085_v15, %v1327_v58  ;;  %v736_v24 = vmul.f32 %v1085_v15, %v1331_v0 }
 0x235   : > { %v741_v25 = vadd.f32 %v1086_v16, %v729_v17  ;;  %v742_v26 = vadd.f32 %v1086_v16, %v730_v18  ;;  %v743_v27 = vadd.f32 %v1086_v16, %v731_v19  ;;  %v1442_v28 = vadd.f32 %v1086_v16, %v732_v20 }
 0x236   : > { %v1444_v43 = vadd.f32 %v1086_v16, %v733_v21  ;;  %v1446_v49 = vadd.f32 %v1086_v16, %v734_v22  ;;  %v1448_v55 = vadd.f32 %v1086_v16, %v735_v23  ;;  %v1450_v61 = vadd.f32 %v1086_v16, %v736_v24 }
 0x237   : > { %v749_v46 = vsub.f32 0.0, %v741_v25  ;;  %v750_v29 = vsub.f32 0.0, %v742_v26  ;;  %v751_v52 = vsub.f32 0.0, %v743_v27  ;;  %v752_v58 = vsub.f32 0.0, %v1442_v28 }
 0x238   : > { %v753_v0 = vsub.f32 0.0, %v1444_v43  ;;  %v754_v30 = vsub.f32 0.0, %v1446_v49  ;;  %v755_v31 = vsub.f32 0.0, %v1448_v55  ;;  %v756_v36 = vsub.f32 0.0, %v1450_v61 }
 0x239   : > { %v757_v32 = vmul.f32 1.442695, %v749_v46  ;;  %v759_v33 = vmul.f32 1.442695, %v750_v29  ;;  %v761_v34 = vmul.f32 1.442695, %v751_v52 }
 0x23a   : > { %v763_v35 = vmul.f32 1.442695, %v752_v58  ;;  %v765_v37 = vmul.f32 1.442695, %v753_v0  ;;  %v767_v38 = vmul.f32 1.442695, %v754_v30 }
 0x23b   : > { %1087 = vpow2.f32 %v757_v32  ;;  %v769_v41 = vmul.f32 1.442695, %v755_v31  ;;  %v771_v42 = vmul.f32 1.442695, %v756_v36 }
 0x23c   : > { %1089 = vpow2.f32 %v759_v33 }
 0x23d   : > { %1091 = vpow2.f32 %v761_v34 }
 0x23e   : > { %1093 = vpow2.f32 %v763_v35 }
 0x23f   : > { %1095 = vpow2.f32 %v765_v37 }
 0x240   : > { %1097 = vpow2.f32 %v767_v38 }
 0x241   : > { %v1088_v40 = vpop.eup %1087  ;;  %1099 = vpow2.f32 %v769_v41 }
 0x242   : > { %v1090_v44 = vpop.eup %1089  ;;  %v773_v39 = vadd.f32 1.0, %v1088_v40  ;;  %1101 = vpow2.f32 %v771_v42 }
 0x243   : > { %v1092_v45 = vpop.eup %1091  ;;  %v774_v47 = vadd.f32 1.0, %v1090_v44 }
 0x244   : > { %v1094_v48 = vpop.eup %1093  ;;  %1103 = vrcp.f32 %v773_v39  ;;  %v775_v50 = vadd.f32 1.0, %v1092_v45 }
 0x245   : > { %v1096_v51 = vpop.eup %1095  ;;  %1105 = vrcp.f32 %v774_v47  ;;  %v776_v53 = vadd.f32 1.0, %v1094_v48 }
 0x246   : > { %v1098_v54 = vpop.eup %1097  ;;  %1107 = vrcp.f32 %v775_v50  ;;  %v777_v56 = vadd.f32 1.0, %v1096_v51 }
 0x247   : > { %v1100_v57 = vpop.eup %1099  ;;  %1109 = vrcp.f32 %v776_v53  ;;  %v778_v59 = vadd.f32 1.0, %v1098_v54 }
 0x248   : > { %v1102_v60 = vpop.eup %1101  ;;  %1111 = vrcp.f32 %v777_v56  ;;  %v779_v62 = vadd.f32 1.0, %v1100_v57 }
 0x249   : > { %1113 = vrcp.f32 %v778_v59  ;;  %v780_v63 = vadd.f32 1.0, %v1102_v60 }
 0x24a   : > { %v1104_v1 = vpop.eup %1103  ;;  %1115 = vrcp.f32 %v779_v62 }
 0x24b   : > { %v1106_v2 = vpop.eup %1105  ;;  %v789_v3 = vmul.f32 %v1104_v1, %v741_v25  ;;  %1117 = vrcp.f32 %v780_v63 }
 0x24c   : > { %v1108_v4 = vpop.eup %1107  ;;  %v790_v5 = vmul.f32 %v1106_v2, %v742_v26 }
 0x24d   : > { %v1110_v6 = vpop.eup %1109  ;;  %797 = vst [vmem:[%s1499_s4] sm:$0xff] %v789_v3  ;;  %v791_v7 = vmul.f32 %v1108_v4, %v743_v27 }
 0x24e   : > { %v1112_v8 = vpop.eup %1111  ;;  %798 = vst [vmem:[%s1499_s4 + $0x8] sm:$0xff] %v790_v5  ;;  %v792_v9 = vmul.f32 %v1110_v6, %v1442_v28 }
 0x24f   : > { %v1114_v10 = vpop.eup %1113  ;;  %799 = vst [vmem:[%s1499_s4 + $0x10] sm:$0xff] %v791_v7  ;;  %v793_v11 = vmul.f32 %v1112_v8, %v1444_v43 }
 0x250   : > { %v1116_v12 = vpop.eup %1115  ;;  %800 = vst [vmem:[%s1499_s4 + $0x18] sm:$0xff] %v792_v9  ;;  %v794_v13 = vmul.f32 %v1114_v10, %v1446_v49 }
 0x251   : > { %v1118_v14 = vpop.eup %1117  ;;  %801 = vst [vmem:[%s1499_s4 + $0x20] sm:$0xff] %v793_v11  ;;  %v795_v15 = vmul.f32 %v1116_v12, %v1448_v55 }
 0x252   : > { %802 = vst [vmem:[%s1499_s4 + $0x28] sm:$0xff] %v794_v13  ;;  %v796_v16 = vmul.f32 %v1118_v14, %v1450_v61 }
 0x253   : > { %803 = vst [vmem:[%s1499_s4 + $0x30] sm:$0xff] %v795_v15 }
 0x254   : > { %804 = vst [vmem:[%s1499_s4 + $0x38] sm:$0xff] %v796_v16 }
 0x255 PF: > { %s14_s17 = sadd.s32 1, %s1141_s17   ;;  %s1500_s15 = smov %s1137_s16 }
 0x256   : > { %p11_p8 = scmp.ge.s32.totalorder %s14_s17, 4   ;;  %s1501_s16 = smov %s1503_s18 }
 0x258   :  { %13 = sbr.rel (!%p11_p8) target bundleno = 2 (0x2), region = 82 }

</bundles_post_ra>
